<compile_context>
chip_gen: v7x
topology: tpu7x:2x2x1
jax: 0.10.0
libtpu: 0.0.40
codegen_flags: <defaults>
</compile_context>

<pallas_src>
from functools import partial

import jax
import jax.numpy as jnp
from jax.experimental import pallas as pl
from jax.experimental.pallas import tpu as pltpu

HID1 = 256
HID2 = 128


def _round_up(n, m):
    return ((n + m - 1) // m) * m


def _leaky_relu(x, negative_slope=0.01):
    # max(x, a*x) == LeakyReLU(x) for 0 < a < 1; one VPU op instead of cmp+sel.
    return jnp.maximum(x, negative_slope * x)


def discriminator_kernel(xT_ref, w1_ref, b1_ref, w2_ref, b2_ref, w3_ref, b3_ref,
                         o_ref):
    # xT_ref: (K_pad, TB) bf16   (batch on lanes)
    # w1_ref: (256, K_pad) bf16, b1_ref: (256, 1) f32
    # w2_ref: (128, 256)  bf16,  b2_ref: (128, 1) f32
    # w3_ref: (128, 1)    f32,   b3_ref: (1, 1)   f32
    # o_ref : (1, 1, TB)  f32

    # Layer 1: (256, K_pad) @ (K_pad, TB) -> (256, TB), f32 accumulation on MXU.
    h1 = jnp.dot(w1_ref[...], xT_ref[...], preferred_element_type=jnp.float32)
    h1 = _leaky_relu(h1 + b1_ref[...])

    # Layer 2: (128, 256) @ (256, TB) -> (128, TB).
    h2 = jnp.dot(w2_ref[...], h1.astype(jnp.bfloat16),
                 preferred_element_type=jnp.float32)
    h2 = _leaky_relu(h2 + b2_ref[...])

    # Layer 3 (Linear(128 -> 1)): an N=1 matmul wastes 127/128 MXU lanes, so do
    # it on the VPU/XLU: elementwise multiply + sublane reduction -> (1, TB).
    logits = jnp.sum(h2 * w3_ref[...], axis=0, keepdims=True) + b3_ref[...]

    # Sigmoid in f32 on the EUP (written explicitly for robust lowering).
    o_ref[0] = (1.0 / (1.0 + jnp.exp(-logits))).astype(o_ref.dtype)


def prepare_params(params, input_dim, k_pad):
    """Convert PyTorch-layout params (W: [out,in], b: [out]) to kernel layout."""
    w1, b1, w2, b2, w3, b3 = params
    w1p = jnp.zeros((HID1, k_pad), jnp.bfloat16).at[:, :input_dim].set(
        w1.astype(jnp.bfloat16))                       # (256, K_pad) bf16
    b1c = b1.astype(jnp.float32).reshape(HID1, 1)      # (256, 1)
    w2p = w2.astype(jnp.bfloat16)                      # (128, 256) bf16
    b2c = b2.astype(jnp.float32).reshape(HID2, 1)      # (128, 1)
    w3c = w3.astype(jnp.float32).reshape(HID2, 1)      # (128, 1) column
    b3c = b3.astype(jnp.float32).reshape(1, 1)         # (1, 1)
    return w1p, b1c, w2p, b2c, w3c, b3c


@partial(jax.jit, static_argnames=("tb",))
def discriminator_forward(x, prepared, *, tb=512):
    w1p, b1c, w2p, b2c, w3c, b3c = prepared
    B, in_dim = x.shape
    k_pad = w1p.shape[1]
    b_pad = _round_up(B, tb)
    num_tiles = b_pad // tb

    # Zero-pad features/batch, cast to bf16, and put the batch on the lane axis.
    xp = jnp.zeros((b_pad, k_pad), jnp.bfloat16).at[:B, :in_dim].set(
        x.astype(jnp.bfloat16))
    xT = xp.T  # (k_pad, b_pad)

    out = pl.pallas_call(
        discriminator_kernel,
        out_shape=jax.ShapeDtypeStruct((num_tiles, 1, tb), jnp.float32),
        grid_spec=pltpu.PrefetchScalarGridSpec(
            num_scalar_prefetch=0,
            grid=(num_tiles,),
            in_specs=[
                pl.BlockSpec((k_pad, tb), lambda i: (0, i)),    # x tile streams
                pl.BlockSpec((HID1, k_pad), lambda i: (0, 0)),  # weights stay
                pl.BlockSpec((HID1, 1), lambda i: (0, 0)),      #   VMEM-resident
                pl.BlockSpec((HID2, HID1), lambda i: (0, 0)),
                pl.BlockSpec((HID2, 1), lambda i: (0, 0)),
                pl.BlockSpec((HID2, 1), lambda i: (0, 0)),
                pl.BlockSpec((1, 1), lambda i: (0, 0)),
            ],
            out_specs=pl.BlockSpec((1, 1, tb), lambda i: (i, 0, 0)),
        ),
        compiler_params=pltpu.CompilerParams(
            dimension_semantics=("parallel",),
        ),
    )(xT, w1p, b1c, w2p, b2c, w3c, b3c)

    # (num_tiles, 1, tb) -> (b_pad, 1) -> drop batch padding.
    return out.reshape(b_pad, 1)[:B]


def init_params(key, input_dim=50):
    """Deterministic PyTorch-Linear-like init, in PyTorch layout (W:[out,in])."""
    ks = jax.random.split(key, 6)

    def lin(kw, kb, fan_in, fan_out):
        bound = 1.0 / (fan_in ** 0.5)
        w = jax.random.uniform(kw, (fan_out, fan_in), jnp.float32, -bound, bound)
        b = jax.random.uniform(kb, (fan_out,), jnp.float32, -bound, bound)
        return w, b

    w1, b1 = lin(ks[0], ks[1], input_dim, HID1)
    w2, b2 = lin(ks[2], ks[3], HID1, HID2)
    w3, b3 = lin(ks[4], ks[5], HID2, 1)
    return (w1, b1, w2, b2, w3, b3)


def reference_forward(x, params):
    """Pure-JAX f32 reference with PyTorch semantics."""
    w1, b1, w2, b2, w3, b3 = params
    h = x @ w1.T + b1
    h = jnp.maximum(h, 0.01 * h)
    h = h @ w2.T + b2
    h = jnp.maximum(h, 0.01 * h)
    logits = h @ w3.T + b3
    return 1.0 / (1.0 + jnp.exp(-logits))


if __name__ == "__main__":
    key = jax.random.PRNGKey(0)
    kx, kp = jax.random.split(key)

    B, input_dim = 8, 50
    x = jax.random.normal(kx, (B, input_dim), jnp.float32)
    params = init_params(kp, input_dim=input_dim)
    prepared = prepare_params(params, input_dim, k_pad=_round_up(input_dim, 128))

    out = discriminator_forward(x, prepared, tb=512)
    out = jax.block_until_ready(out)

    ref = reference_forward(x, params)
    assert out.shape == (B, 1), out.shape
    max_err = float(jnp.max(jnp.abs(out - ref)))
    # bf16 matmul inputs with f32 accumulation vs pure-f32 reference.
    assert max_err < 2e-2, f"max abs err {max_err}"

    print("KERNEL_OK")
</pallas_src>

<mosaic_0001>
module attributes {stable_mosaic.version = 11 : i64} {
  func.func @discriminator_kernel(%arg0: i32, %arg1: memref<128x512xbf16, #tpu.memory_space<vmem>>, %arg2: memref<256x128xbf16, #tpu.memory_space<vmem>>, %arg3: memref<256x1xf32, #tpu.memory_space<vmem>>, %arg4: memref<128x256xbf16, #tpu.memory_space<vmem>>, %arg5: memref<128x1xf32, #tpu.memory_space<vmem>>, %arg6: memref<128x1xf32, #tpu.memory_space<vmem>>, %arg7: memref<1x1xf32, #tpu.memory_space<vmem>>, %arg8: memref<1x1x512xf32, #tpu.memory_space<vmem>>) attributes {dimension_semantics = [#tpu.dimension_semantics<parallel>], iteration_bounds = array<i64: 1>, scalar_prefetch = 0 : i64, scratch_operands = 0 : i64, tpu.core_type = #tpu.core_type<tc>, window_params = [{transform_indices = @transform_0, window_bounds = array<i64: 128, 512>}, {pipeline_mode = #tpu.pipeline_mode<synchronous>, transform_indices = @transform_1, window_bounds = array<i64: 256, 128>}, {pipeline_mode = #tpu.pipeline_mode<synchronous>, transform_indices = @transform_2, window_bounds = array<i64: 256, 1>}, {pipeline_mode = #tpu.pipeline_mode<synchronous>, transform_indices = @transform_3, window_bounds = array<i64: 128, 256>}, {pipeline_mode = #tpu.pipeline_mode<synchronous>, transform_indices = @transform_4, window_bounds = array<i64: 128, 1>}, {pipeline_mode = #tpu.pipeline_mode<synchronous>, transform_indices = @transform_5, window_bounds = array<i64: 128, 1>}, {pipeline_mode = #tpu.pipeline_mode<synchronous>, transform_indices = @transform_6, window_bounds = array<i64: 1, 1>}, {transform_indices = @transform_7, window_bounds = array<i64: 1, 1, 512>}]} {
    %c0 = arith.constant 0 : index
    %c0_0 = arith.constant 0 : index
    %0 = vector.load %arg2[%c0, %c0_0] : memref<256x128xbf16, #tpu.memory_space<vmem>>, vector<256x128xbf16>
    %c0_1 = arith.constant 0 : index
    %c0_2 = arith.constant 0 : index
    %1 = vector.load %arg1[%c0_1, %c0_2] : memref<128x512xbf16, #tpu.memory_space<vmem>>, vector<128x512xbf16>
    %cst = arith.constant dense<0.000000e+00> : vector<256x512xf32>
    %2 = tpu.matmul %0, %1, %cst {dimension_numbers = #tpu.dot_dimension_numbers<[1], [0], [0], [1], [0, 0, 1, 1], [], []>} : vector<256x128xbf16>, vector<128x512xbf16>, vector<256x512xf32> -> vector<256x512xf32>
    %c0_3 = arith.constant 0 : index
    %c0_4 = arith.constant 0 : index
    %3 = vector.load %arg3[%c0_3, %c0_4] : memref<256x1xf32, #tpu.memory_space<vmem>>, vector<256x1xf32>
    %4 = vector.broadcast %3 : vector<256x1xf32> to vector<256x512xf32>
    %5 = arith.addf %2, %4 : vector<256x512xf32>
    %cst_5 = arith.constant 0.00999999977 : f32
    %6 = vector.broadcast %cst_5 : f32 to vector<256x512xf32>
    %7 = arith.mulf %6, %5 : vector<256x512xf32>
    %8 = arith.maximumf %5, %7 : vector<256x512xf32>
    %c0_6 = arith.constant 0 : index
    %c0_7 = arith.constant 0 : index
    %9 = vector.load %arg4[%c0_6, %c0_7] : memref<128x256xbf16, #tpu.memory_space<vmem>>, vector<128x256xbf16>
    %10 = arith.truncf %8 : vector<256x512xf32> to vector<256x512xbf16>
    %cst_8 = arith.constant dense<0.000000e+00> : vector<128x512xf32>
    %11 = tpu.matmul %9, %10, %cst_8 {dimension_numbers = #tpu.dot_dimension_numbers<[1], [0], [0], [1], [0, 0, 1, 1], [], []>} : vector<128x256xbf16>, vector<256x512xbf16>, vector<128x512xf32> -> vector<128x512xf32>
    %c0_9 = arith.constant 0 : index
    %c0_10 = arith.constant 0 : index
    %12 = vector.load %arg5[%c0_9, %c0_10] : memref<128x1xf32, #tpu.memory_space<vmem>>, vector<128x1xf32>
    %13 = vector.broadcast %12 : vector<128x1xf32> to vector<128x512xf32>
    %14 = arith.addf %11, %13 : vector<128x512xf32>
    %cst_11 = arith.constant 0.00999999977 : f32
    %15 = vector.broadcast %cst_11 : f32 to vector<128x512xf32>
    %16 = arith.mulf %15, %14 : vector<128x512xf32>
    %17 = arith.maximumf %14, %16 : vector<128x512xf32>
    %c0_12 = arith.constant 0 : index
    %c0_13 = arith.constant 0 : index
    %18 = vector.load %arg6[%c0_12, %c0_13] : memref<128x1xf32, #tpu.memory_space<vmem>>, vector<128x1xf32>
    %19 = vector.broadcast %18 : vector<128x1xf32> to vector<128x512xf32>
    %20 = arith.mulf %17, %19 : vector<128x512xf32>
    %cst_14 = arith.constant dense<0.000000e+00> : vector<512xf32>
    %21 = vector.multi_reduction <add>, %20, %cst_14 [0] : vector<128x512xf32> to vector<512xf32>
    %22 = vector.shape_cast %21 : vector<512xf32> to vector<1x512xf32>
    %c0_15 = arith.constant 0 : index
    %c0_16 = arith.constant 0 : index
    %23 = vector.load %arg7[%c0_15, %c0_16] : memref<1x1xf32, #tpu.memory_space<vmem>>, vector<1x1xf32>
    %24 = vector.broadcast %23 : vector<1x1xf32> to vector<1x512xf32>
    %25 = arith.addf %22, %24 : vector<1x512xf32>
    %cst_17 = arith.constant 0.000000e+00 : f32
    %26 = vector.broadcast %cst_17 : f32 to vector<1x512xf32>
    %27 = arith.subf %26, %25 : vector<1x512xf32>
    %28 = math.exp %27 : vector<1x512xf32>
    %cst_18 = arith.constant 1.000000e+00 : f32
    %29 = vector.broadcast %cst_18 : f32 to vector<1x512xf32>
    %30 = arith.addf %29, %28 : vector<1x512xf32>
    %cst_19 = arith.constant 1.000000e+00 : f32
    %31 = vector.broadcast %cst_19 : f32 to vector<1x512xf32>
    %32 = arith.divf %31, %30 : vector<1x512xf32>
    %c0_20 = arith.constant 0 : index
    %c0_21 = arith.constant 0 : index
    %c0_22 = arith.constant 0 : index
    %33 = vector.load %arg8[%c0_20, %c0_21, %c0_22] : memref<1x1x512xf32, #tpu.memory_space<vmem>>, vector<1x1x512xf32>
    %34 = vector.shape_cast %33 : vector<1x1x512xf32> to vector<1x512xf32>
    %35 = vector.shape_cast %32 : vector<1x512xf32> to vector<1x1x512xf32>
    tpu.vector_store %arg8[%c0_20, %c0_21, %c0_22], %35 {strides = array<i32>} : memref<1x1x512xf32, #tpu.memory_space<vmem>>, vector<1x1x512xf32>,
    return
  }
  func.func @transform_0(%arg0: i32) -> (i32, i32) {
    %c0_i32 = arith.constant 0 : i32
    %c0_i32_0 = arith.constant 0 : i32
    return %c0_i32, %arg0 : i32, i32
  }
  func.func @transform_1(%arg0: i32) -> (i32, i32) {
    %c0_i32 = arith.constant 0 : i32
    %c0_i32_0 = arith.constant 0 : i32
    %c0_i32_1 = arith.constant 0 : i32
    return %c0_i32, %c0_i32_0 : i32, i32
  }
  func.func @transform_2(%arg0: i32) -> (i32, i32) {
    %c0_i32 = arith.constant 0 : i32
    %c0_i32_0 = arith.constant 0 : i32
    %c0_i32_1 = arith.constant 0 : i32
    return %c0_i32, %c0_i32_0 : i32, i32
  }
  func.func @transform_3(%arg0: i32) -> (i32, i32) {
    %c0_i32 = arith.constant 0 : i32
    %c0_i32_0 = arith.constant 0 : i32
    %c0_i32_1 = arith.constant 0 : i32
    return %c0_i32, %c0_i32_0 : i32, i32
  }
  func.func @transform_4(%arg0: i32) -> (i32, i32) {
    %c0_i32 = arith.constant 0 : i32
    %c0_i32_0 = arith.constant 0 : i32
    %c0_i32_1 = arith.constant 0 : i32
    return %c0_i32, %c0_i32_0 : i32, i32
  }
  func.func @transform_5(%arg0: i32) -> (i32, i32) {
    %c0_i32 = arith.constant 0 : i32
    %c0_i32_0 = arith.constant 0 : i32
    %c0_i32_1 = arith.constant 0 : i32
    return %c0_i32, %c0_i32_0 : i32, i32
  }
  func.func @transform_6(%arg0: i32) -> (i32, i32) {
    %c0_i32 = arith.constant 0 : i32
    %c0_i32_0 = arith.constant 0 : i32
    %c0_i32_1 = arith.constant 0 : i32
    return %c0_i32, %c0_i32_0 : i32, i32
  }
  func.func @transform_7(%arg0: i32) -> (i32, i32, i32) {
    %c0_i32 = arith.constant 0 : i32
    %c0_i32_0 = arith.constant 0 : i32
    %c0_i32_1 = arith.constant 0 : i32
    return %arg0, %c0_i32, %c0_i32_0 : i32, i32, i32
  }
}

</mosaic_0001>

<bundles_post_ra>
// kernel: discriminator_forward.1
= control target key start
LH: loop header
LB: loop body
LE: loop exit
PB: predicated region body
PF: predicated region fallthrough
CT: control target
= control target key end

     0   :  { %v2285_v0 = vmov 0   ;;  %s2897_s2 = inlined_call_operand.vmem [shape: f32[256,1], index: 2, kind: input, shape index: {}]   ;;  %s2898_s0 = inlined_call_operand.vmem [shape: bf16[128,512], index: 0, kind: input, shape index: {}]   ;;  %s2899_s6 = inlined_call_operand.<no memory space> [shape: f32[1,1], index: 6, kind: input, shape index: {}]   ;;  %s2900_s1 = inlined_call_operand.vmem [shape: bf16[256,128], index: 1, kind: input, shape index: {}]   ;;  %s2901_s4 = inlined_call_operand.vmem [shape: f32[128,1], index: 4, kind: input, shape index: {}]   ;;  %s2902_s5 = inlined_call_operand.vmem [shape: f32[128,1], index: 5, kind: input, shape index: {}]   ;;  %s2903_s3 = inlined_call_operand.vmem [shape: bf16[128,256], index: 3, kind: input, shape index: {}]   ;;  %s2904_s7 = inlined_call_operand.vmem [shape: f32[1,1,512], index: 7, kind: output, shape index: {}]  }
   0x1   :  { %2179 = vset.pattern.permute.xlu0 %v2285_v0  ;;  %2180 = vset.pattern.permute.xlu1 %v2285_v0  ;;  %v93_v1 = vld [vmem:[%s2897_s2] sm:$0xff]  ;;  %v95_v2 = vld [vmem:[%s2897_s2 + $0x10] sm:$0xff]  ;;  %v12_v4 = vstv %s2899_s6  ;;  %v2183_v5 = vld [vmem:[%s2898_s0 + $0xc] ss:$16 sps:$4 sm:$0xff]  }
   0x2   :  { %127 = vperm.xlu0 %2179, %v93_v1   ;;  %137 = vperm.xlu1 %2180, %v95_v2   ;;  %v2181_v3 = vld [vmem:[%s2898_s0 + $0x4] ss:$16 sps:$4 sm:$0xff]   ;;  %v2185_v6 = vld [vmem:[%s2898_s0] ss:$16 sps:$4 sm:$0xff]   ;;  %13 = vst [vmem:[#allocation2] sm:$0x1] %v12_v4 }
   0x3   :  { %573 = vmatprep.mubr.bf16.mxu0 %v2285_v0  ;;  %766 = vmatprep.mubr.bf16.mxu1 %v2285_v0  ;;  %v2186_v7 = vld [vmem:[%s2898_s0 + $0x8] ss:$16 sps:$4 sm:$0xff]   ;;  %v2187_v10 = vld [vmem:[%s2898_s0 + $0x24] ss:$16 sps:$4 sm:$0xff]   ;;  %v2189_v11 = vld [vmem:[%s2898_s0 + $0x2c] ss:$16 sps:$4 sm:$0xff]  }
   0x4   :  { %541 = vmatprep.subr.bf16.mxu0 %v2181_v3  ;;  %v94_v8 = vld [vmem:[%s2897_s2 + $0x8] sm:$0xff]  ;;  %v96_v9 = vld [vmem:[%s2897_s2 + $0x18] sm:$0xff]  ;;  %734 = vmatprep.subr.bf16.mxu1 %v2183_v5  ;;  %v2191_v12 = vld [vmem:[%s2898_s0 + $0x20] ss:$16 sps:$4 sm:$0xff]  }
   0x5   :  { %542 = vmatpush1.bf16.msra.mxu0 %v2185_v6  ;;  %735 = vmatpush1.bf16.msra.mxu1 %v2186_v7  ;;  %v2192_v13 = vld [vmem:[%s2898_s0 + $0x28] ss:$16 sps:$4 sm:$0xff]   ;;  %v97_v14 = vld [vmem:[%s2897_s2 + $0x20] sm:$0xff]  ;;  %v2195_v17 = vld [vmem:[%s2898_s0 + $0x4c] ss:$16 sps:$4 sm:$0xff]  }
   0x6   :  { %132 = vperm.xlu0 %2179, %v94_v8   ;;  %142 = vperm.xlu1 %2180, %v96_v9   ;;  %v98_v15 = vld [vmem:[%s2897_s2 + $0x28] sm:$0xff]  ;;  %v2193_v16 = vld [vmem:[%s2898_s0 + $0x44] ss:$16 sps:$4 sm:$0xff]   ;;  %v2197_v18 = vld [vmem:[%s2898_s0 + $0x40] ss:$16 sps:$4 sm:$0xff]  }
   0x7   :  { %543 = vmatprep.subr.bf16.mxu0 %v2187_v10  ;;  %736 = vmatprep.subr.bf16.mxu1 %v2189_v11  ;;  %v2198_v19 = vld [vmem:[%s2898_s0 + $0x48] ss:$16 sps:$4 sm:$0xff]   ;;  %v99_v20 = vld [vmem:[%s2897_s2 + $0x30] sm:$0xff]  ;;  %v2201_v23 = vld [vmem:[%s2898_s0 + $0x6c] ss:$16 sps:$4 sm:$0xff]  }
   0x8   :  { %v100_v21 = vld [vmem:[%s2897_s2 + $0x38] sm:$0xff]  ;;  %v2199_v22 = vld [vmem:[%s2898_s0 + $0x64] ss:$16 sps:$4 sm:$0xff]   ;;  %v2203_v24 = vld [vmem:[%s2898_s0 + $0x60] ss:$16 sps:$4 sm:$0xff]  }
   0x9   :  { %544 = vmatpush1.bf16.msra.mxu0 %v2191_v12  ;;  %737 = vmatpush1.bf16.msra.mxu1 %v2192_v13  ;;  %v2204_v25 = vld [vmem:[%s2898_s0 + $0x68] ss:$16 sps:$4 sm:$0xff]   ;;  %v101_v26 = vld [vmem:[%s2897_s2 + $0x40] sm:$0xff]  ;;  %v2207_v29 = vld [vmem:[%s2898_s0 + $0x8c] ss:$16 sps:$4 sm:$0xff]  }
   0xa   :  { %147 = vperm.xlu0 %2179, %v97_v14   ;;  %152 = vperm.xlu1 %2180, %v98_v15   ;;  %v102_v27 = vld [vmem:[%s2897_s2 + $0x48] sm:$0xff]  ;;  %v2205_v28 = vld [vmem:[%s2898_s0 + $0x84] ss:$16 sps:$4 sm:$0xff]   ;;  %v2209_v30 = vld [vmem:[%s2898_s0 + $0x80] ss:$16 sps:$4 sm:$0xff]  }
   0xb   :  { %545 = vmatprep.subr.bf16.mxu0 %v2193_v16  ;;  %738 = vmatprep.subr.bf16.mxu1 %v2195_v17  ;;  %v2210_v31 = vld [vmem:[%s2898_s0 + $0x88] ss:$16 sps:$4 sm:$0xff]   ;;  %v103_v32 = vld [vmem:[%s2897_s2 + $0x50] sm:$0xff]  ;;  %v2213_v35 = vld [vmem:[%s2898_s0 + $0xac] ss:$16 sps:$4 sm:$0xff]  }
   0xc   :  { %v2211_v33 = vld [vmem:[%s2898_s0 + $0xa4] ss:$16 sps:$4 sm:$0xff]   ;;  %v104_v34 = vld [vmem:[%s2897_s2 + $0x58] sm:$0xff]  ;;  %v2215_v36 = vld [vmem:[%s2898_s0 + $0xa0] ss:$16 sps:$4 sm:$0xff]  }
   0xd   :  { %546 = vmatpush1.bf16.msra.mxu0 %v2197_v18  ;;  %739 = vmatpush1.bf16.msra.mxu1 %v2198_v19  ;;  %v2216_v37 = vld [vmem:[%s2898_s0 + $0xa8] ss:$16 sps:$4 sm:$0xff]   ;;  %v105_v38 = vld [vmem:[%s2897_s2 + $0x60] sm:$0xff]  ;;  %v2219_v41 = vld [vmem:[%s2898_s0 + $0xcc] ss:$16 sps:$4 sm:$0xff]  }
   0xe   :  { %157 = vperm.xlu0 %2179, %v99_v20   ;;  %162 = vperm.xlu1 %2180, %v100_v21   ;;  %v2217_v39 = vld [vmem:[%s2898_s0 + $0xc4] ss:$16 sps:$4 sm:$0xff]   ;;  %v106_v40 = vld [vmem:[%s2897_s2 + $0x68] sm:$0xff]  ;;  %v2221_v42 = vld [vmem:[%s2898_s0 + $0xc0] ss:$16 sps:$4 sm:$0xff]  }
   0xf   :  { %547 = vmatprep.subr.bf16.mxu0 %v2199_v22  ;;  %740 = vmatprep.subr.bf16.mxu1 %v2201_v23  ;;  %v2222_v43 = vld [vmem:[%s2898_s0 + $0xc8] ss:$16 sps:$4 sm:$0xff]   ;;  %v107_v44 = vld [vmem:[%s2897_s2 + $0x70] sm:$0xff]  ;;  %v2225_v47 = vld [vmem:[%s2898_s0 + $0xec] ss:$16 sps:$4 sm:$0xff]  }
  0x10   :  { %v108_v45 = vld [vmem:[%s2897_s2 + $0x78] sm:$0xff]  ;;  %v2223_v46 = vld [vmem:[%s2898_s0 + $0xe4] ss:$16 sps:$4 sm:$0xff]   ;;  %v2227_v48 = vld [vmem:[%s2898_s0 + $0xe0] ss:$16 sps:$4 sm:$0xff]  }
  0x11   :  { %548 = vmatpush1.bf16.msra.mxu0 %v2203_v24  ;;  %741 = vmatpush1.bf16.msra.mxu1 %v2204_v25  ;;  %v2228_v49 = vld [vmem:[%s2898_s0 + $0xe8] ss:$16 sps:$4 sm:$0xff]   ;;  %v109_v50 = vld [vmem:[%s2897_s2 + $0x80] sm:$0xff]  ;;  %v111_v53 = vld [vmem:[%s2897_s2 + $0x90] sm:$0xff] }
  0x12   :  { %167 = vperm.xlu0 %2179, %v101_v26   ;;  %172 = vperm.xlu1 %2180, %v102_v27   ;;  %v110_v51 = vld [vmem:[%s2897_s2 + $0x88] sm:$0xff]  ;;  %v2229_v52 = vld [vmem:[%s2900_s1] sm:$0xff]   ;;  %v112_v54 = vld [vmem:[%s2897_s2 + $0x98] sm:$0xff] }
  0x13   :  { %549 = vmatprep.subr.bf16.mxu0 %v2205_v28  ;;  %742 = vmatprep.subr.bf16.mxu1 %v2207_v29  ;;  %v113_v55 = vld [vmem:[%s2897_s2 + $0xa0] sm:$0xff]  ;;  %v114_v56 = vld [vmem:[%s2897_s2 + $0xa8] sm:$0xff]  ;;  %v115_v58 = vld [vmem:[%s2897_s2 + $0xb0] sm:$0xff] }
  0x14   :  { %v2230_v57 = vld [vmem:[%s2900_s1 + $0x8] sm:$0xff]   ;;  %v116_v59 = vld [vmem:[%s2897_s2 + $0xb8] sm:$0xff]  ;;  %v117_v60 = vld [vmem:[%s2897_s2 + $0xc0] sm:$0xff] }
  0x15   :  { %550 = vmatpush1.bf16.msra.mxu0 %v2209_v30  ;;  %743 = vmatpush1.bf16.msra.mxu1 %v2210_v31  ;;  %v118_v61 = vld [vmem:[%s2897_s2 + $0xc8] sm:$0xff]  ;;  %v2231_v62 = vld [vmem:[%s2900_s1 + $0x10] sm:$0xff]   ;;  %v120_v1 = vld [vmem:[%s2897_s2 + $0xd8] sm:$0xff] }
  0x16   :  { %177 = vperm.xlu0 %2179, %v103_v32   ;;  %182 = vperm.xlu1 %2180, %v104_v34   ;;  %v119_v63 = vld [vmem:[%s2897_s2 + $0xd0] sm:$0xff]  ;;  %v121_v2 = vld [vmem:[%s2897_s2 + $0xe0] sm:$0xff]  ;;  %v122_v3 = vld [vmem:[%s2897_s2 + $0xe8] sm:$0xff] }
  0x17   :  { %551 = vmatprep.subr.bf16.mxu0 %v2211_v33  ;;  %744 = vmatprep.subr.bf16.mxu1 %v2213_v35  ;;  %v2232_v4 = vld [vmem:[%s2900_s1 + $0x18] sm:$0xff]   ;;  %v123_v5 = vld [vmem:[%s2897_s2 + $0xf0] sm:$0xff]  ;;  %v1263_v7 = vld [vmem:[%s2901_s4] sm:$0xff] }
  0x18   :  { %v124_v6 = vld [vmem:[%s2897_s2 + $0xf8] sm:$0xff]  ;;  %v1264_v8 = vld [vmem:[%s2901_s4 + $0x8] sm:$0xff]  ;;  %v2233_v9 = vld [vmem:[%s2900_s1 + $0x20] sm:$0xff]  }
  0x19   :  { %552 = vmatpush1.bf16.msra.mxu0 %v2215_v36  ;;  %745 = vmatpush1.bf16.msra.mxu1 %v2216_v37  ;;  %v1265_v10 = vld [vmem:[%s2901_s4 + $0x10] sm:$0xff]  ;;  %v1266_v11 = vld [vmem:[%s2901_s4 + $0x18] sm:$0xff]  ;;  %v1267_v12 = vld [vmem:[%s2901_s4 + $0x20] sm:$0xff] }
  0x1a   :  { %187 = vperm.xlu0 %2179, %v105_v38   ;;  %192 = vperm.xlu1 %2180, %v106_v40   ;;  %v1793_v13 = vld [vmem:[%s2902_s5] sm:$0xff]  ;;  %v2234_v14 = vld [vmem:[%s2900_s1 + $0x28] sm:$0xff]   ;;  %v1795_v17 = vld [vmem:[%s2902_s5 + $0x10] sm:$0xff] }
  0x1b   :  { %553 = vmatprep.subr.bf16.mxu0 %v2217_v39  ;;  %746 = vmatprep.subr.bf16.mxu1 %v2219_v41  ;;  %v1794_v15 = vld [vmem:[%s2902_s5 + $0x8] sm:$0xff]  ;;  %v1269_v18 = vld [vmem:[%s2901_s4 + $0x30] sm:$0xff]  ;;  %v1796_v20 = vld [vmem:[%s2902_s5 + $0x18] sm:$0xff] }
  0x1c   :  { %v1268_v16 = vld [vmem:[%s2901_s4 + $0x28] sm:$0xff]  ;;  %v2235_v19 = vld [vmem:[%s2900_s1 + $0x30] sm:$0xff]   ;;  %v1270_v21 = vld [vmem:[%s2901_s4 + $0x38] sm:$0xff] }
  0x1d   :  { %554 = vmatpush1.bf16.msra.mxu0 %v2221_v42  ;;  %747 = vmatpush1.bf16.msra.mxu1 %v2222_v43  ;;  %v1797_v22 = vld [vmem:[%s2902_s5 + $0x20] sm:$0xff]  ;;  %v2236_v24 = vld [vmem:[%s2900_s1 + $0x38] sm:$0xff]   ;;  %v1798_v25 = vld [vmem:[%s2902_s5 + $0x28] sm:$0xff] }
  0x1e   :  { %197 = vperm.xlu0 %2179, %v107_v44   ;;  %202 = vperm.xlu1 %2180, %v108_v45   ;;  %v1271_v23 = vld [vmem:[%s2901_s4 + $0x40] sm:$0xff]  ;;  %v1272_v26 = vld [vmem:[%s2901_s4 + $0x48] sm:$0xff]  ;;  %v1799_v27 = vld [vmem:[%s2902_s5 + $0x30] sm:$0xff] }
  0x1f   :  { %555 = vmatprep.subr.bf16.mxu0 %v2223_v46  ;;  %748 = vmatprep.subr.bf16.mxu1 %v2225_v47  ;;  %v1273_v28 = vld [vmem:[%s2901_s4 + $0x50] sm:$0xff]  ;;  %v2237_v29 = vld [vmem:[%s2900_s1 + $0x40] sm:$0xff]   ;;  %v1800_v30 = vld [vmem:[%s2902_s5 + $0x38] sm:$0xff] }
  0x20   :  { %v1274_v31 = vld [vmem:[%s2901_s4 + $0x58] sm:$0xff]  ;;  %v1801_v32 = vld [vmem:[%s2902_s5 + $0x40] sm:$0xff]  ;;  %v2238_v34 = vld [vmem:[%s2900_s1 + $0x48] sm:$0xff]  }
  0x21   :  { %556 = vmatpush1.bf16.msra.mxu0 %v2227_v48  ;;  %749 = vmatpush1.bf16.msra.mxu1 %v2228_v49  ;;  %v1275_v33 = vld [vmem:[%s2901_s4 + $0x60] sm:$0xff]  ;;  %v1802_v35 = vld [vmem:[%s2902_s5 + $0x48] sm:$0xff]  ;;  %v1803_v37 = vld [vmem:[%s2902_s5 + $0x50] sm:$0xff] }
  0x22   :  { %207 = vperm.xlu0 %2179, %v109_v50   ;;  %212 = vperm.xlu1 %2180, %v110_v51   ;;  %v1276_v36 = vld [vmem:[%s2901_s4 + $0x68] sm:$0xff]  ;;  %v1277_v38 = vld [vmem:[%s2901_s4 + $0x70] sm:$0xff]  ;;  %v1804_v40 = vld [vmem:[%s2902_s5 + $0x58] sm:$0xff] }
  0x23   :  { %v2239_v39 = vld [vmem:[%s2900_s1 + $0x50] sm:$0xff]   ;;  %v1278_v41 = vld [vmem:[%s2901_s4 + $0x78] sm:$0xff]  ;;  %v1805_v42 = vld [vmem:[%s2902_s5 + $0x60] sm:$0xff] }
  0x24   :  { %574 = vmatmul.mubr.bf16.vlgmr.msra.gmra.mrb[0].mxu0 %v2229_v52  ;;  %767 = vmatmul.mubr.bf16.vlgmr.msra.gmra.mrb[0].mxu1 %v2229_v52  ;;  %v1806_v43 = vld [vmem:[%s2902_s5 + $0x68] sm:$0xff]  ;;  %v2240_v44 = vld [vmem:[%s2900_s1 + $0x58] sm:$0xff]   ;;  %v1807_v45 = vld [vmem:[%s2902_s5 + $0x70] sm:$0xff] }
  0x25   :  { %583 = vmatprep.mubr.bf16.mxu0 %v2285_v0  ;;  %776 = vmatprep.mubr.bf16.mxu1 %v2285_v0  ;;  %v1808_v46 = vld [vmem:[%s2902_s5 + $0x78] sm:$0xff]  ;;  %v2037_v47 = vld [vmem:[#allocation2] sm:$0x1]  ;;  %v2242_v49 = vld [vmem:[%s2900_s1 + $0x68] sm:$0xff]  }
  0x26   :  { %217 = vperm.xlu0 %2179, %v111_v53   ;;  %222 = vperm.xlu1 %2180, %v112_v54   ;;  %v2241_v48 = vld [vmem:[%s2900_s1 + $0x60] sm:$0xff]   ;;  %v2243_v50 = vld [vmem:[%s2900_s1 + $0x70] sm:$0xff]   ;;  %v2244_v51 = vld [vmem:[%s2900_s1 + $0x78] sm:$0xff]  }
  0x2a   :  { %227 = vperm.xlu0 %2179, %v113_v55   ;;  %232 = vperm.xlu1 %2180, %v114_v56  }
  0x2c   :  { %584 = vmatmul.mubr.bf16.gmra.mrb[4].mxu0 %v2230_v57  ;;  %777 = vmatmul.mubr.bf16.gmra.mrb[4].mxu1 %v2230_v57 }
  0x2d   :  { %593 = vmatprep.mubr.bf16.mxu0 %v2285_v0  ;;  %786 = vmatprep.mubr.bf16.mxu1 %v2285_v0 }
  0x2e   :  { %237 = vperm.xlu0 %2179, %v115_v58   ;;  %242 = vperm.xlu1 %2180, %v116_v59  }
  0x32   :  { %247 = vperm.xlu0 %2179, %v117_v60   ;;  %252 = vperm.xlu1 %2180, %v118_v61  }
  0x34   :  { %594 = vmatmul.mubr.bf16.gmra.mrb[8].mxu0 %v2231_v62  ;;  %787 = vmatmul.mubr.bf16.gmra.mrb[8].mxu1 %v2231_v62 }
  0x35   :  { %603 = vmatprep.mubr.bf16.mxu0 %v2285_v0  ;;  %796 = vmatprep.mubr.bf16.mxu1 %v2285_v0 }
  0x36   :  { %257 = vperm.xlu0 %2179, %v119_v63   ;;  %262 = vperm.xlu1 %2180, %v120_v1  }
  0x3a   :  { %267 = vperm.xlu0 %2179, %v121_v2   ;;  %272 = vperm.xlu1 %2180, %v122_v3  }
  0x3c   :  { %604 = vmatmul.mubr.bf16.gmra.mrb[12].mxu0 %v2232_v4  ;;  %797 = vmatmul.mubr.bf16.gmra.mrb[12].mxu1 %v2232_v4 }
  0x3d   :  { %613 = vmatprep.mubr.bf16.mxu0 %v2285_v0  ;;  %806 = vmatprep.mubr.bf16.mxu1 %v2285_v0 }
  0x3e   :  { %277 = vperm.xlu0 %2179, %v123_v5   ;;  %282 = vperm.xlu1 %2180, %v124_v6  }
  0x42   :  { %1281 = vperm.xlu0 %2179, %v1263_v7   ;;  %1286 = vperm.xlu1 %2180, %v1264_v8  }
  0x44   :  { %614 = vmatmul.mubr.bf16.gmra.mrb[16].mxu0 %v2233_v9  ;;  %807 = vmatmul.mubr.bf16.gmra.mrb[16].mxu1 %v2233_v9 }
  0x45   :  { %623 = vmatprep.mubr.bf16.mxu0 %v2285_v0  ;;  %816 = vmatprep.mubr.bf16.mxu1 %v2285_v0 }
  0x46   :  { %1291 = vperm.xlu0 %2179, %v1265_v10   ;;  %1296 = vperm.xlu1 %2180, %v1266_v11  }
  0x4a   :  { %1301 = vperm.xlu0 %2179, %v1267_v12   ;;  %1811 = vperm.xlu1 %2180, %v1793_v13  }
  0x4c   :  { %624 = vmatmul.mubr.bf16.gmra.mrb[20].mxu0 %v2234_v14  ;;  %817 = vmatmul.mubr.bf16.gmra.mrb[20].mxu1 %v2234_v14 }
  0x4d   :  { %633 = vmatprep.mubr.bf16.mxu0 %v2285_v0  ;;  %826 = vmatprep.mubr.bf16.mxu1 %v2285_v0 }
  0x4e   :  { %1816 = vperm.xlu0 %2179, %v1794_v15   ;;  %1306 = vperm.xlu1 %2180, %v1268_v16  }
  0x52   :  { %1821 = vperm.xlu0 %2179, %v1795_v17   ;;  %1311 = vperm.xlu1 %2180, %v1269_v18   ;;  %v2247_v18 = vld [vmem:[%s2903_s3 + $0x4] ss:$8 sps:$4 sm:$0xff]  }
  0x54   :  { %634 = vmatmul.mubr.bf16.gmra.mrb[24].mxu0 %v2235_v19  ;;  %827 = vmatmul.mubr.bf16.gmra.mrb[24].mxu1 %v2235_v19 }
  0x55   :  { %643 = vmatprep.mubr.bf16.mxu0 %v2285_v0  ;;  %836 = vmatprep.mubr.bf16.mxu1 %v2285_v0 }
  0x56   :  { %1826 = vperm.xlu0 %2179, %v1796_v20   ;;  %1316 = vperm.xlu1 %2180, %v1270_v21  }
  0x5a   :  { %1831 = vperm.xlu0 %2179, %v1797_v22   ;;  %1321 = vperm.xlu1 %2180, %v1271_v23  }
  0x5c   :  { %644 = vmatmul.mubr.bf16.gmra.mrb[28].mxu0 %v2236_v24  ;;  %837 = vmatmul.mubr.bf16.gmra.mrb[28].mxu1 %v2236_v24 }
  0x5d   :  { %653 = vmatprep.mubr.bf16.mxu0 %v2285_v0  ;;  %846 = vmatprep.mubr.bf16.mxu1 %v2285_v0 }
  0x5e   :  { %1836 = vperm.xlu0 %2179, %v1798_v25   ;;  %1326 = vperm.xlu1 %2180, %v1272_v26  }
  0x62   :  { %1841 = vperm.xlu0 %2179, %v1799_v27   ;;  %1331 = vperm.xlu1 %2180, %v1273_v28  }
  0x64   :  { %654 = vmatmul.mubr.bf16.gmra.mrb[32].mxu0 %v2237_v29  ;;  %847 = vmatmul.mubr.bf16.gmra.mrb[32].mxu1 %v2237_v29 }
  0x65   :  { %663 = vmatprep.mubr.bf16.mxu0 %v2285_v0  ;;  %856 = vmatprep.mubr.bf16.mxu1 %v2285_v0 }
  0x66   :  { %1846 = vperm.xlu0 %2179, %v1800_v30   ;;  %1336 = vperm.xlu1 %2180, %v1274_v31  }
  0x6a   :  { %1851 = vperm.xlu0 %2179, %v1801_v32   ;;  %1341 = vperm.xlu1 %2180, %v1275_v33  }
  0x6c   :  { %664 = vmatmul.mubr.bf16.gmra.mrb[36].mxu0 %v2238_v34  ;;  %857 = vmatmul.mubr.bf16.gmra.mrb[36].mxu1 %v2238_v34 }
  0x6d   :  { %673 = vmatprep.mubr.bf16.mxu0 %v2285_v0  ;;  %866 = vmatprep.mubr.bf16.mxu1 %v2285_v0 }
  0x6e   :  { %1856 = vperm.xlu0 %2179, %v1802_v35   ;;  %1346 = vperm.xlu1 %2180, %v1276_v36  }
  0x72   :  { %1861 = vperm.xlu0 %2179, %v1803_v37   ;;  %1351 = vperm.xlu1 %2180, %v1277_v38  }
  0x74   :  { %674 = vmatmul.mubr.bf16.gmra.mrb[40].mxu0 %v2239_v39  ;;  %867 = vmatmul.mubr.bf16.gmra.mrb[40].mxu1 %v2239_v39 }
  0x75   :  { %683 = vmatprep.mubr.bf16.mxu0 %v2285_v0  ;;  %876 = vmatprep.mubr.bf16.mxu1 %v2285_v0 }
  0x76   :  { %1866 = vperm.xlu0 %2179, %v1804_v40   ;;  %1356 = vperm.xlu1 %2180, %v1278_v41  }
  0x7a   :  { %1871 = vperm.xlu0 %2179, %v1805_v42   ;;  %1876 = vperm.xlu1 %2180, %v1806_v43  }
  0x7c   :  { %684 = vmatmul.mubr.bf16.gmra.mrb[44].mxu0 %v2240_v44  ;;  %877 = vmatmul.mubr.bf16.gmra.mrb[44].mxu1 %v2240_v44 }
  0x7d   :  { %693 = vmatprep.mubr.bf16.mxu0 %v2285_v0  ;;  %886 = vmatprep.mubr.bf16.mxu1 %v2285_v0 }
  0x7e   :  { %1881 = vperm.xlu0 %2179, %v1807_v45   ;;  %1886 = vperm.xlu1 %2180, %v1808_v46  }
  0x81   :  { %v128_v52 = vpop.permute.xlu0 %127  ;;  %v138_v63 = vpop.permute.xlu1 %137 }
  0x82   :  { %2040 = vperm.xlu0 %2179, %v2037_v47  }
  0x84   :  { %694 = vmatmul.mubr.bf16.gmra.mrb[48].mxu0 %v2241_v48  ;;  %887 = vmatmul.mubr.bf16.gmra.mrb[48].mxu1 %v2241_v48 }
  0x85   :  { %703 = vmatprep.mubr.bf16.mxu0 %v2285_v0  ;;  %896 = vmatprep.mubr.bf16.mxu1 %v2285_v0  ;;  %v133_v57 = vpop.permute.xlu0 %132  ;;  %v143_v24 = vpop.permute.xlu1 %142 }
  0x89   :  { %v148_v48 = vpop.permute.xlu0 %147 }
  0x8c   :  { %704 = vmatmul.mubr.bf16.gmra.mrb[52].mxu0 %v2242_v49  ;;  %897 = vmatmul.mubr.bf16.gmra.mrb[52].mxu1 %v2242_v49 }
  0x8d   :  { %713 = vmatprep.mubr.bf16.mxu0 %v2285_v0  ;;  %906 = vmatprep.mubr.bf16.mxu1 %v2285_v0 }
  0x94   :  { %714 = vmatmul.mubr.bf16.gmra.mrb[56].mxu0 %v2243_v50  ;;  %907 = vmatmul.mubr.bf16.gmra.mrb[56].mxu1 %v2243_v50 }
  0x95   :  { %723 = vmatprep.mubr.bf16.mxu0 %v2285_v0  ;;  %916 = vmatprep.mubr.bf16.mxu1 %v2285_v0 }
  0x9c   :  { %724 = vmatmul.mubr.bf16.gmra.mrb[60].mxu0 %v2244_v51  ;;  %917 = vmatmul.mubr.bf16.gmra.mrb[60].mxu1 %v2244_v51 }
  0x9d   :  { %1471 = vmatprep.mubr.bf16.mxu0 %v2247_v18  ;;  %1584 = vmatprep.mubr.bf16.mxu1 %v2247_v18 }
  0xf7   :  { %v575_v53 = vpop.f32.mrb[0].mxu0  ;;  %v768_v55 = vpop.f32.mrb[0].mxu1 }
  0xf8   :  { %v576_v54 = vadd.f32 %v575_v53, %v128_v52  ;;  %v577_v56 = vpop.f32.mrb[1].mxu0  ;;  %v769_v58 = vadd.f32 %v768_v55, %v128_v52  ;;  %v770_v59 = vpop.f32.mrb[1].mxu1 }
  0xf9   :  { %v578_v60 = vadd.f32 %v577_v56, %v128_v52  ;;  %v579_v61 = vpop.f32.mrb[2].mxu0  ;;  %v772_v62 = vpop.f32.mrb[2].mxu1  ;;  %v771_v5 = vadd.f32 %v770_v59, %v128_v52 }
  0xfa   :  { %v927_v1 = vmul.f32 0.01, %v576_v54  ;;  %v929_v0 = vmul.f32 0.01, %v769_v58  ;;  %v580_v2 = vadd.f32 %v579_v61, %v133_v57  ;;  %v773_v3 = vadd.f32 %v772_v62, %v133_v57  ;;  %v581_v4 = vpop.f32.mrb[3].mxu0  ;;  %v774_v7 = vpop.f32.mrb[3].mxu1 }
  0xfb   :  { %v582_v6 = vadd.f32 %v581_v4, %v133_v57  ;;  %v928_v10 = vmul.f32 0.01, %v578_v60  ;;  %v775_v12 = vadd.f32 %v774_v7, %v133_v57  ;;  %v930_v19 = vmul.f32 0.01, %v771_v5  ;;  %v153_v53 = vpop.permute.xlu1 %152 }
  0xfc   :  { %v931_v8 = vmul.f32 0.01, %v580_v2  ;;  %v933_v9 = vmul.f32 0.01, %v773_v3  ;;  %v1055_v13 = vmax.f32 %v576_v54, %v927_v1  ;;  %v1057_v14 = vmax.f32 %v769_v58, %v929_v0 }
  0xfd   :  { %v932_v11 = vmul.f32 0.01, %v582_v6  ;;  %v934_v20 = vmul.f32 0.01, %v775_v12  ;;  %v1056_v30 = vmax.f32 %v578_v60, %v928_v10  ;;  %v1058_v45 = vmax.f32 %v771_v5, %v930_v19 }
  0xfe   :  { %v1059_v15 = vmax.f32 %v580_v2, %v931_v8  ;;  %v1061_v16 = vmax.f32 %v773_v3, %v933_v9 }
  0xff   :  { %v585_v17 = vpop.f32.mrb[4].mxu0  ;;  %v778_v22 = vpop.f32.mrb[4].mxu1  ;;  %v1060_v31 = vmax.f32 %v582_v6, %v932_v11  ;;  %v1062_v35 = vmax.f32 %v775_v12, %v934_v20 }
 0x100   :  { %v586_v21 = vadd.f32 %v585_v17, %v138_v63  ;;  %v587_v23 = vpop.f32.mrb[5].mxu0  ;;  %v1199_v25 = vpack.c.bf16 %v1059_v15, %v1055_v13  ;;  %v1201_v26 = vpack.c.bf16 %v1061_v16, %v1057_v14  ;;  %v779_v27 = vadd.f32 %v778_v22, %v138_v63  ;;  %v780_v29 = vpop.f32.mrb[5].mxu1 }
 0x101   :  { %v588_v28 = vadd.f32 %v587_v23, %v138_v63  ;;  %v589_v33 = vpop.f32.mrb[6].mxu0  ;;  %v782_v34 = vpop.f32.mrb[6].mxu1  ;;  %v781_v42 = vadd.f32 %v780_v29, %v138_v63  ;;  %v1200_v52 = vpack.c.bf16 %v1060_v31, %v1056_v30  ;;  %v1202_v57 = vpack.c.bf16 %v1062_v35, %v1058_v45 }
 0x102   :  { %v935_v32 = vmul.f32 0.01, %v586_v21  ;;  %v937_v36 = vmul.f32 0.01, %v779_v27  ;;  %v590_v37 = vadd.f32 %v589_v33, %v143_v24  ;;  %v783_v38 = vadd.f32 %v782_v34, %v143_v24  ;;  %v591_v39 = vpop.f32.mrb[7].mxu0  ;;  %v784_v40 = vpop.f32.mrb[7].mxu1 }
 0x103   :  { %v936_v41 = vmul.f32 0.01, %v588_v28  ;;  %v592_v43 = vadd.f32 %v591_v39, %v143_v24  ;;  %v785_v44 = vadd.f32 %v784_v40, %v143_v24  ;;  %v938_v60 = vmul.f32 0.01, %v781_v42  ;;  %1439 = vmatprep.subr.bf16.mxu0 %v1200_v52  ;;  %1552 = vmatprep.subr.bf16.mxu1 %v1202_v57  ;;  %v158_v24 = vpop.permute.xlu0 %157 }
 0x104   :  { %v939_v46 = vmul.f32 0.01, %v590_v37  ;;  %v941_v47 = vmul.f32 0.01, %v783_v38  ;;  %v1063_v49 = vmax.f32 %v586_v21, %v935_v32  ;;  %v1065_v54 = vmax.f32 %v779_v27, %v937_v36  ;;  %1440 = vmatpush1.bf16.msra.mxu0 %v1199_v25  ;;  %1553 = vmatpush1.bf16.msra.mxu1 %v1201_v26 }
 0x105   :  { %v940_v50 = vmul.f32 0.01, %v592_v43  ;;  %v942_v51 = vmul.f32 0.01, %v785_v44  ;;  %v1064_v59 = vmax.f32 %v588_v28, %v936_v41  ;;  %v1066_v17 = vmax.f32 %v781_v42, %v938_v60  ;;  %v163_v28 = vpop.permute.xlu1 %162 }
 0x106   :  { %v1067_v55 = vmax.f32 %v590_v37, %v939_v46  ;;  %v1069_v56 = vmax.f32 %v783_v38, %v941_v47 }
 0x107   :  { %v595_v58 = vpop.f32.mrb[8].mxu0  ;;  %v1068_v61 = vmax.f32 %v592_v43, %v940_v50  ;;  %v788_v63 = vpop.f32.mrb[8].mxu1  ;;  %v1070_v6 = vmax.f32 %v785_v44, %v942_v51 }
 0x108   :  { %v596_v62 = vadd.f32 %v595_v58, %v148_v48  ;;  %v597_v1 = vpop.f32.mrb[9].mxu0  ;;  %v1203_v0 = vpack.c.bf16 %v1067_v55, %v1063_v49  ;;  %v1205_v2 = vpack.c.bf16 %v1069_v56, %v1065_v54  ;;  %v789_v3 = vadd.f32 %v788_v63, %v148_v48  ;;  %v790_v4 = vpop.f32.mrb[9].mxu1 }
 0x109   :  { %v599_v5 = vpop.f32.mrb[10].mxu0  ;;  %v598_v8 = vadd.f32 %v597_v1, %v148_v48  ;;  %v792_v10 = vpop.f32.mrb[10].mxu1  ;;  %v1204_v16 = vpack.c.bf16 %v1068_v61, %v1064_v59  ;;  %v791_v19 = vadd.f32 %v790_v4, %v148_v48  ;;  %v1206_v27 = vpack.c.bf16 %v1070_v6, %v1066_v17 }
 0x10a   :  { %v943_v7 = vmul.f32 0.01, %v596_v62  ;;  %v600_v9 = vadd.f32 %v599_v5, %v153_v53  ;;  %v601_v11 = vpop.f32.mrb[11].mxu0  ;;  %v945_v12 = vmul.f32 0.01, %v789_v3  ;;  %v793_v13 = vadd.f32 %v792_v10, %v153_v53  ;;  %v794_v15 = vpop.f32.mrb[11].mxu1 }
 0x10b   :  { %v602_v14 = vadd.f32 %v601_v11, %v153_v53  ;;  %v944_v18 = vmul.f32 0.01, %v598_v8  ;;  %v795_v23 = vadd.f32 %v794_v15, %v153_v53  ;;  %1441 = vmatprep.subr.bf16.mxu0 %v1204_v16  ;;  %v946_v35 = vmul.f32 0.01, %v791_v19  ;;  %1554 = vmatprep.subr.bf16.mxu1 %v1206_v27  ;;  %v168_v63 = vpop.permute.xlu0 %167  ;;  %v173_v4 = vpop.permute.xlu1 %172 }
 0x10c   :  { %v947_v20 = vmul.f32 0.01, %v600_v9  ;;  %v949_v21 = vmul.f32 0.01, %v793_v13  ;;  %v1071_v25 = vmax.f32 %v596_v62, %v943_v7  ;;  %1442 = vmatpush1.bf16.msra.mxu0 %v1203_v0  ;;  %v1073_v29 = vmax.f32 %v789_v3, %v945_v12  ;;  %1555 = vmatpush1.bf16.msra.mxu1 %v1205_v2 }
 0x10d   :  { %v948_v22 = vmul.f32 0.01, %v602_v14  ;;  %v950_v32 = vmul.f32 0.01, %v795_v23  ;;  %v1072_v34 = vmax.f32 %v598_v8, %v944_v18  ;;  %v1074_v57 = vmax.f32 %v791_v19, %v946_v35 }
 0x10e   :  { %v1075_v26 = vmax.f32 %v600_v9, %v947_v20  ;;  %v1077_v30 = vmax.f32 %v793_v13, %v949_v21 }
 0x10f   :  { %v1076_v31 = vmax.f32 %v602_v14, %v948_v22  ;;  %v605_v33 = vpop.f32.mrb[12].mxu0  ;;  %v798_v38 = vpop.f32.mrb[12].mxu1  ;;  %v1078_v41 = vmax.f32 %v795_v23, %v950_v32 }
 0x110   :  { %v1207_v36 = vpack.c.bf16 %v1075_v26, %v1071_v25  ;;  %v606_v37 = vadd.f32 %v605_v33, %v158_v24  ;;  %v607_v39 = vpop.f32.mrb[13].mxu0  ;;  %v1209_v40 = vpack.c.bf16 %v1077_v30, %v1073_v29  ;;  %v799_v42 = vadd.f32 %v798_v38, %v158_v24  ;;  %v800_v44 = vpop.f32.mrb[13].mxu1 }
 0x111   :  { %v608_v43 = vadd.f32 %v607_v39, %v158_v24  ;;  %v609_v45 = vpop.f32.mrb[14].mxu0  ;;  %v801_v47 = vadd.f32 %v800_v44, %v158_v24  ;;  %v802_v49 = vpop.f32.mrb[14].mxu1  ;;  %v1208_v51 = vpack.c.bf16 %v1076_v31, %v1072_v34  ;;  %v1210_v3 = vpack.c.bf16 %v1078_v41, %v1074_v57 }
 0x112   :  { %v951_v46 = vmul.f32 0.01, %v606_v37  ;;  %v610_v48 = vadd.f32 %v609_v45, %v163_v28  ;;  %v611_v50 = vpop.f32.mrb[15].mxu0  ;;  %v953_v52 = vmul.f32 0.01, %v799_v42  ;;  %v803_v54 = vadd.f32 %v802_v49, %v163_v28  ;;  %v804_v56 = vpop.f32.mrb[15].mxu1 }
 0x113   :  { %v952_v53 = vmul.f32 0.01, %v608_v43  ;;  %v612_v55 = vadd.f32 %v611_v50, %v163_v28  ;;  %v954_v58 = vmul.f32 0.01, %v801_v47  ;;  %v805_v60 = vadd.f32 %v804_v56, %v163_v28  ;;  %1443 = vmatprep.subr.bf16.mxu0 %v1208_v51  ;;  %1556 = vmatprep.subr.bf16.mxu1 %v1210_v3  ;;  %v178_v38 = vpop.permute.xlu0 %177 }
 0x114   :  { %v955_v59 = vmul.f32 0.01, %v610_v48  ;;  %v957_v61 = vmul.f32 0.01, %v803_v54  ;;  %1444 = vmatpush1.bf16.msra.mxu0 %v1207_v36  ;;  %v1079_v1 = vmax.f32 %v606_v37, %v951_v46  ;;  %v1081_v5 = vmax.f32 %v799_v42, %v953_v52  ;;  %1557 = vmatpush1.bf16.msra.mxu1 %v1209_v40  ;;  %v183_v42 = vpop.permute.xlu1 %182 }
 0x115   :  { %v956_v62 = vmul.f32 0.01, %v612_v55  ;;  %v958_v2 = vmul.f32 0.01, %v805_v60  ;;  %v1080_v6 = vmax.f32 %v608_v43, %v952_v53  ;;  %v1082_v10 = vmax.f32 %v801_v47, %v954_v58 }
 0x116   :  { %v1083_v0 = vmax.f32 %v610_v48, %v955_v59  ;;  %v1085_v7 = vmax.f32 %v803_v54, %v957_v61 }
 0x117   :  { %v1084_v8 = vmax.f32 %v612_v55, %v956_v62  ;;  %v615_v9 = vpop.f32.mrb[16].mxu0  ;;  %v1086_v12 = vmax.f32 %v805_v60, %v958_v2  ;;  %v808_v14 = vpop.f32.mrb[16].mxu1 }
 0x118   :  { %v1211_v11 = vpack.c.bf16 %v1083_v0, %v1079_v1  ;;  %v616_v13 = vadd.f32 %v615_v9, %v168_v63  ;;  %v617_v15 = vpop.f32.mrb[17].mxu0  ;;  %v1213_v16 = vpack.c.bf16 %v1085_v7, %v1081_v5  ;;  %v809_v17 = vadd.f32 %v808_v14, %v168_v63  ;;  %v810_v19 = vpop.f32.mrb[17].mxu1 }
 0x119   :  { %v618_v18 = vadd.f32 %v617_v15, %v168_v63  ;;  %v619_v20 = vpop.f32.mrb[18].mxu0  ;;  %v1212_v21 = vpack.c.bf16 %v1084_v8, %v1080_v6  ;;  %v811_v23 = vadd.f32 %v810_v19, %v168_v63  ;;  %v812_v25 = vpop.f32.mrb[18].mxu1  ;;  %v1214_v27 = vpack.c.bf16 %v1086_v12, %v1082_v10 }
 0x11a   :  { %v959_v22 = vmul.f32 0.01, %v616_v13  ;;  %v620_v24 = vadd.f32 %v619_v20, %v173_v4  ;;  %v621_v26 = vpop.f32.mrb[19].mxu0  ;;  %v961_v28 = vmul.f32 0.01, %v809_v17  ;;  %v813_v30 = vadd.f32 %v812_v25, %v173_v4  ;;  %v814_v32 = vpop.f32.mrb[19].mxu1 }
 0x11b   :  { %v960_v29 = vmul.f32 0.01, %v618_v18  ;;  %v622_v31 = vadd.f32 %v621_v26, %v173_v4  ;;  %1445 = vmatprep.subr.bf16.mxu0 %v1212_v21  ;;  %v962_v33 = vmul.f32 0.01, %v811_v23  ;;  %v815_v35 = vadd.f32 %v814_v32, %v173_v4  ;;  %1558 = vmatprep.subr.bf16.mxu1 %v1214_v27  ;;  %v188_v12 = vpop.permute.xlu0 %187 }
 0x11c   :  { %v963_v34 = vmul.f32 0.01, %v620_v24  ;;  %1446 = vmatpush1.bf16.msra.mxu0 %v1211_v11  ;;  %v965_v36 = vmul.f32 0.01, %v813_v30  ;;  %1559 = vmatpush1.bf16.msra.mxu1 %v1213_v16  ;;  %v1087_v39 = vmax.f32 %v616_v13, %v959_v22  ;;  %v1089_v43 = vmax.f32 %v809_v17, %v961_v28  ;;  %v193_v16 = vpop.permute.xlu1 %192 }
 0x11d   :  { %v964_v37 = vmul.f32 0.01, %v622_v31  ;;  %v966_v41 = vmul.f32 0.01, %v815_v35  ;;  %v1088_v44 = vmax.f32 %v618_v18, %v960_v29  ;;  %v1090_v48 = vmax.f32 %v811_v23, %v962_v33 }
 0x11e   :  { %v1091_v40 = vmax.f32 %v620_v24, %v963_v34  ;;  %v1093_v45 = vmax.f32 %v813_v30, %v965_v36 }
 0x11f   :  { %v1092_v46 = vmax.f32 %v622_v31, %v964_v37  ;;  %v625_v47 = vpop.f32.mrb[20].mxu0  ;;  %v1094_v50 = vmax.f32 %v815_v35, %v966_v41  ;;  %v818_v52 = vpop.f32.mrb[20].mxu1 }
 0x120   :  { %v1215_v49 = vpack.c.bf16 %v1091_v40, %v1087_v39  ;;  %v626_v51 = vadd.f32 %v625_v47, %v178_v38  ;;  %v627_v53 = vpop.f32.mrb[21].mxu0  ;;  %v1217_v54 = vpack.c.bf16 %v1093_v45, %v1089_v43  ;;  %v819_v55 = vadd.f32 %v818_v52, %v178_v38  ;;  %v820_v57 = vpop.f32.mrb[21].mxu1 }
 0x121   :  { %v628_v56 = vadd.f32 %v627_v53, %v178_v38  ;;  %v629_v58 = vpop.f32.mrb[22].mxu0  ;;  %v1216_v59 = vpack.c.bf16 %v1092_v46, %v1088_v44  ;;  %v821_v61 = vadd.f32 %v820_v57, %v178_v38  ;;  %v822_v63 = vpop.f32.mrb[22].mxu1  ;;  %v1218_v0 = vpack.c.bf16 %v1094_v50, %v1090_v48 }
 0x122   :  { %v967_v60 = vmul.f32 0.01, %v626_v51  ;;  %v630_v62 = vadd.f32 %v629_v58, %v183_v42  ;;  %v631_v1 = vpop.f32.mrb[23].mxu0  ;;  %v969_v2 = vmul.f32 0.01, %v819_v55  ;;  %v823_v4 = vadd.f32 %v822_v63, %v183_v42  ;;  %v824_v6 = vpop.f32.mrb[23].mxu1 }
 0x123   :  { %v968_v3 = vmul.f32 0.01, %v628_v56  ;;  %v632_v5 = vadd.f32 %v631_v1, %v183_v42  ;;  %1447 = vmatprep.subr.bf16.mxu0 %v1216_v59  ;;  %v970_v7 = vmul.f32 0.01, %v821_v61  ;;  %v825_v9 = vadd.f32 %v824_v6, %v183_v42  ;;  %1560 = vmatprep.subr.bf16.mxu1 %v1218_v0  ;;  %v198_v50 = vpop.permute.xlu0 %197 }
 0x124   :  { %v971_v8 = vmul.f32 0.01, %v630_v62  ;;  %1448 = vmatpush1.bf16.msra.mxu0 %v1215_v49  ;;  %v973_v10 = vmul.f32 0.01, %v823_v4  ;;  %1561 = vmatpush1.bf16.msra.mxu1 %v1217_v54  ;;  %v1095_v13 = vmax.f32 %v626_v51, %v967_v60  ;;  %v1097_v17 = vmax.f32 %v819_v55, %v969_v2  ;;  %v203_v54 = vpop.permute.xlu1 %202 }
 0x125   :  { %v972_v11 = vmul.f32 0.01, %v632_v5  ;;  %v974_v15 = vmul.f32 0.01, %v825_v9  ;;  %v1096_v18 = vmax.f32 %v628_v56, %v968_v3  ;;  %v1098_v22 = vmax.f32 %v821_v61, %v970_v7 }
 0x126   :  { %v1099_v14 = vmax.f32 %v630_v62, %v971_v8  ;;  %v1101_v19 = vmax.f32 %v823_v4, %v973_v10 }
 0x127   :  { %v1100_v20 = vmax.f32 %v632_v5, %v972_v11  ;;  %v635_v21 = vpop.f32.mrb[24].mxu0  ;;  %v1102_v24 = vmax.f32 %v825_v9, %v974_v15  ;;  %v828_v26 = vpop.f32.mrb[24].mxu1 }
 0x128   :  { %v1219_v23 = vpack.c.bf16 %v1099_v14, %v1095_v13  ;;  %v636_v25 = vadd.f32 %v635_v21, %v188_v12  ;;  %v637_v27 = vpop.f32.mrb[25].mxu0  ;;  %v1221_v28 = vpack.c.bf16 %v1101_v19, %v1097_v17  ;;  %v829_v29 = vadd.f32 %v828_v26, %v188_v12  ;;  %v830_v31 = vpop.f32.mrb[25].mxu1 }
 0x129   :  { %v638_v30 = vadd.f32 %v637_v27, %v188_v12  ;;  %v639_v32 = vpop.f32.mrb[26].mxu0  ;;  %v1220_v33 = vpack.c.bf16 %v1100_v20, %v1096_v18  ;;  %v831_v35 = vadd.f32 %v830_v31, %v188_v12  ;;  %v832_v37 = vpop.f32.mrb[26].mxu1  ;;  %v1222_v39 = vpack.c.bf16 %v1102_v24, %v1098_v22 }
 0x12a   :  { %v975_v34 = vmul.f32 0.01, %v636_v25  ;;  %v640_v36 = vadd.f32 %v639_v32, %v193_v16  ;;  %v641_v38 = vpop.f32.mrb[27].mxu0  ;;  %v977_v40 = vmul.f32 0.01, %v829_v29  ;;  %v833_v42 = vadd.f32 %v832_v37, %v193_v16  ;;  %v834_v44 = vpop.f32.mrb[27].mxu1 }
 0x12b   :  { %v976_v41 = vmul.f32 0.01, %v638_v30  ;;  %v642_v43 = vadd.f32 %v641_v38, %v193_v16  ;;  %1449 = vmatprep.subr.bf16.mxu0 %v1220_v33  ;;  %v978_v45 = vmul.f32 0.01, %v831_v35  ;;  %v835_v47 = vadd.f32 %v834_v44, %v193_v16  ;;  %1562 = vmatprep.subr.bf16.mxu1 %v1222_v39  ;;  %v208_v24 = vpop.permute.xlu0 %207 }
 0x12c   :  { %v979_v46 = vmul.f32 0.01, %v640_v36  ;;  %1450 = vmatpush1.bf16.msra.mxu0 %v1219_v23  ;;  %v981_v48 = vmul.f32 0.01, %v833_v42  ;;  %1563 = vmatpush1.bf16.msra.mxu1 %v1221_v28  ;;  %v1103_v51 = vmax.f32 %v636_v25, %v975_v34  ;;  %v1105_v55 = vmax.f32 %v829_v29, %v977_v40  ;;  %v213_v28 = vpop.permute.xlu1 %212 }
 0x12d   :  { %v980_v49 = vmul.f32 0.01, %v642_v43  ;;  %v982_v53 = vmul.f32 0.01, %v835_v47  ;;  %v1104_v56 = vmax.f32 %v638_v30, %v976_v41  ;;  %v1106_v60 = vmax.f32 %v831_v35, %v978_v45 }
 0x12e   :  { %v1107_v52 = vmax.f32 %v640_v36, %v979_v46  ;;  %v1109_v57 = vmax.f32 %v833_v42, %v981_v48 }
 0x12f   :  { %v1108_v58 = vmax.f32 %v642_v43, %v980_v49  ;;  %v645_v59 = vpop.f32.mrb[28].mxu0  ;;  %v1110_v62 = vmax.f32 %v835_v47, %v982_v53  ;;  %v838_v1 = vpop.f32.mrb[28].mxu1 }
 0x130   :  { %v1223_v61 = vpack.c.bf16 %v1107_v52, %v1103_v51  ;;  %v646_v63 = vadd.f32 %v645_v59, %v198_v50  ;;  %v647_v0 = vpop.f32.mrb[29].mxu0  ;;  %v1225_v2 = vpack.c.bf16 %v1109_v57, %v1105_v55  ;;  %v839_v3 = vadd.f32 %v838_v1, %v198_v50  ;;  %v840_v5 = vpop.f32.mrb[29].mxu1 }
 0x131   :  { %v648_v4 = vadd.f32 %v647_v0, %v198_v50  ;;  %v649_v6 = vpop.f32.mrb[30].mxu0  ;;  %v1224_v7 = vpack.c.bf16 %v1108_v58, %v1104_v56  ;;  %v841_v9 = vadd.f32 %v840_v5, %v198_v50  ;;  %v842_v11 = vpop.f32.mrb[30].mxu1  ;;  %v1226_v13 = vpack.c.bf16 %v1110_v62, %v1106_v60 }
 0x132   :  { %v983_v8 = vmul.f32 0.01, %v646_v63  ;;  %v650_v10 = vadd.f32 %v649_v6, %v203_v54  ;;  %v651_v12 = vpop.f32.mrb[31].mxu0  ;;  %v985_v14 = vmul.f32 0.01, %v839_v3  ;;  %v843_v16 = vadd.f32 %v842_v11, %v203_v54  ;;  %v844_v18 = vpop.f32.mrb[31].mxu1 }
 0x133   :  { %v984_v15 = vmul.f32 0.01, %v648_v4  ;;  %v652_v17 = vadd.f32 %v651_v12, %v203_v54  ;;  %1451 = vmatprep.subr.bf16.mxu0 %v1224_v7  ;;  %v986_v19 = vmul.f32 0.01, %v841_v9  ;;  %v845_v21 = vadd.f32 %v844_v18, %v203_v54  ;;  %1564 = vmatprep.subr.bf16.mxu1 %v1226_v13  ;;  %v218_v62 = vpop.permute.xlu0 %217 }
 0x134   :  { %v987_v20 = vmul.f32 0.01, %v650_v10  ;;  %1452 = vmatpush1.bf16.msra.mxu0 %v1223_v61  ;;  %v989_v22 = vmul.f32 0.01, %v843_v16  ;;  %1565 = vmatpush1.bf16.msra.mxu1 %v1225_v2  ;;  %v1111_v25 = vmax.f32 %v646_v63, %v983_v8  ;;  %v1113_v29 = vmax.f32 %v839_v3, %v985_v14  ;;  %v223_v2 = vpop.permute.xlu1 %222 }
 0x135   :  { %v988_v23 = vmul.f32 0.01, %v652_v17  ;;  %v990_v27 = vmul.f32 0.01, %v845_v21  ;;  %v1112_v30 = vmax.f32 %v648_v4, %v984_v15  ;;  %v1114_v34 = vmax.f32 %v841_v9, %v986_v19 }
 0x136   :  { %v1115_v26 = vmax.f32 %v650_v10, %v987_v20  ;;  %v1117_v31 = vmax.f32 %v843_v16, %v989_v22 }
 0x137   :  { %v1116_v32 = vmax.f32 %v652_v17, %v988_v23  ;;  %v655_v33 = vpop.f32.mrb[32].mxu0  ;;  %v1118_v36 = vmax.f32 %v845_v21, %v990_v27  ;;  %v848_v38 = vpop.f32.mrb[32].mxu1 }
 0x138   :  { %v1227_v35 = vpack.c.bf16 %v1115_v26, %v1111_v25  ;;  %v656_v37 = vadd.f32 %v655_v33, %v208_v24  ;;  %v657_v39 = vpop.f32.mrb[33].mxu0  ;;  %v1229_v40 = vpack.c.bf16 %v1117_v31, %v1113_v29  ;;  %v849_v41 = vadd.f32 %v848_v38, %v208_v24  ;;  %v850_v43 = vpop.f32.mrb[33].mxu1 }
 0x139   :  { %v658_v42 = vadd.f32 %v657_v39, %v208_v24  ;;  %v659_v44 = vpop.f32.mrb[34].mxu0  ;;  %v1228_v45 = vpack.c.bf16 %v1116_v32, %v1112_v30  ;;  %v851_v47 = vadd.f32 %v850_v43, %v208_v24  ;;  %v852_v49 = vpop.f32.mrb[34].mxu1  ;;  %v1230_v51 = vpack.c.bf16 %v1118_v36, %v1114_v34 }
 0x13a   :  { %v991_v46 = vmul.f32 0.01, %v656_v37  ;;  %v660_v48 = vadd.f32 %v659_v44, %v213_v28  ;;  %v661_v50 = vpop.f32.mrb[35].mxu0  ;;  %v993_v52 = vmul.f32 0.01, %v849_v41  ;;  %v853_v54 = vadd.f32 %v852_v49, %v213_v28  ;;  %v854_v56 = vpop.f32.mrb[35].mxu1 }
 0x13b   :  { %v992_v53 = vmul.f32 0.01, %v658_v42  ;;  %v662_v55 = vadd.f32 %v661_v50, %v213_v28  ;;  %1453 = vmatprep.subr.bf16.mxu0 %v1228_v45  ;;  %v994_v57 = vmul.f32 0.01, %v851_v47  ;;  %v855_v59 = vadd.f32 %v854_v56, %v213_v28  ;;  %1566 = vmatprep.subr.bf16.mxu1 %v1230_v51  ;;  %v228_v36 = vpop.permute.xlu0 %227 }
 0x13c   :  { %v995_v58 = vmul.f32 0.01, %v660_v48  ;;  %1454 = vmatpush1.bf16.msra.mxu0 %v1227_v35  ;;  %v997_v60 = vmul.f32 0.01, %v853_v54  ;;  %1567 = vmatpush1.bf16.msra.mxu1 %v1229_v40  ;;  %v1119_v63 = vmax.f32 %v656_v37, %v991_v46  ;;  %v1121_v3 = vmax.f32 %v849_v41, %v993_v52  ;;  %v233_v40 = vpop.permute.xlu1 %232 }
 0x13d   :  { %v996_v61 = vmul.f32 0.01, %v662_v55  ;;  %v998_v0 = vmul.f32 0.01, %v855_v59  ;;  %v1120_v4 = vmax.f32 %v658_v42, %v992_v53  ;;  %v1122_v8 = vmax.f32 %v851_v47, %v994_v57 }
 0x13e   :  { %v1123_v1 = vmax.f32 %v660_v48, %v995_v58  ;;  %v1125_v5 = vmax.f32 %v853_v54, %v997_v60 }
 0x13f   :  { %v1124_v6 = vmax.f32 %v662_v55, %v996_v61  ;;  %v665_v7 = vpop.f32.mrb[36].mxu0  ;;  %v1126_v10 = vmax.f32 %v855_v59, %v998_v0  ;;  %v858_v12 = vpop.f32.mrb[36].mxu1 }
 0x140   :  { %v1231_v9 = vpack.c.bf16 %v1123_v1, %v1119_v63  ;;  %v666_v11 = vadd.f32 %v665_v7, %v218_v62  ;;  %v667_v13 = vpop.f32.mrb[37].mxu0  ;;  %v1233_v14 = vpack.c.bf16 %v1125_v5, %v1121_v3  ;;  %v859_v15 = vadd.f32 %v858_v12, %v218_v62  ;;  %v860_v17 = vpop.f32.mrb[37].mxu1 }
 0x141   :  { %v668_v16 = vadd.f32 %v667_v13, %v218_v62  ;;  %v669_v18 = vpop.f32.mrb[38].mxu0  ;;  %v1232_v19 = vpack.c.bf16 %v1124_v6, %v1120_v4  ;;  %v861_v21 = vadd.f32 %v860_v17, %v218_v62  ;;  %v862_v23 = vpop.f32.mrb[38].mxu1  ;;  %v1234_v25 = vpack.c.bf16 %v1126_v10, %v1122_v8 }
 0x142   :  { %v999_v20 = vmul.f32 0.01, %v666_v11  ;;  %v670_v22 = vadd.f32 %v669_v18, %v223_v2  ;;  %v671_v24 = vpop.f32.mrb[39].mxu0  ;;  %v1001_v26 = vmul.f32 0.01, %v859_v15  ;;  %v863_v28 = vadd.f32 %v862_v23, %v223_v2  ;;  %v864_v30 = vpop.f32.mrb[39].mxu1 }
 0x143   :  { %v1000_v27 = vmul.f32 0.01, %v668_v16  ;;  %v672_v29 = vadd.f32 %v671_v24, %v223_v2  ;;  %1455 = vmatprep.subr.bf16.mxu0 %v1232_v19  ;;  %v1002_v31 = vmul.f32 0.01, %v861_v21  ;;  %v865_v33 = vadd.f32 %v864_v30, %v223_v2  ;;  %1568 = vmatprep.subr.bf16.mxu1 %v1234_v25  ;;  %v238_v10 = vpop.permute.xlu0 %237 }
 0x144   :  { %v1003_v32 = vmul.f32 0.01, %v670_v22  ;;  %1456 = vmatpush1.bf16.msra.mxu0 %v1231_v9  ;;  %v1005_v34 = vmul.f32 0.01, %v863_v28  ;;  %1569 = vmatpush1.bf16.msra.mxu1 %v1233_v14  ;;  %v1127_v37 = vmax.f32 %v666_v11, %v999_v20  ;;  %v1129_v41 = vmax.f32 %v859_v15, %v1001_v26  ;;  %v243_v14 = vpop.permute.xlu1 %242 }
 0x145   :  { %v1004_v35 = vmul.f32 0.01, %v672_v29  ;;  %v1006_v39 = vmul.f32 0.01, %v865_v33  ;;  %v1128_v42 = vmax.f32 %v668_v16, %v1000_v27  ;;  %v1130_v46 = vmax.f32 %v861_v21, %v1002_v31 }
 0x146   :  { %v1131_v38 = vmax.f32 %v670_v22, %v1003_v32  ;;  %v1133_v43 = vmax.f32 %v863_v28, %v1005_v34 }
 0x147   :  { %v1132_v44 = vmax.f32 %v672_v29, %v1004_v35  ;;  %v675_v45 = vpop.f32.mrb[40].mxu0  ;;  %v1134_v48 = vmax.f32 %v865_v33, %v1006_v39  ;;  %v868_v50 = vpop.f32.mrb[40].mxu1 }
 0x148   :  { %v1235_v47 = vpack.c.bf16 %v1131_v38, %v1127_v37  ;;  %v676_v49 = vadd.f32 %v675_v45, %v228_v36  ;;  %v677_v51 = vpop.f32.mrb[41].mxu0  ;;  %v1237_v52 = vpack.c.bf16 %v1133_v43, %v1129_v41  ;;  %v869_v53 = vadd.f32 %v868_v50, %v228_v36  ;;  %v870_v55 = vpop.f32.mrb[41].mxu1 }
 0x149   :  { %v678_v54 = vadd.f32 %v677_v51, %v228_v36  ;;  %v679_v56 = vpop.f32.mrb[42].mxu0  ;;  %v1236_v57 = vpack.c.bf16 %v1132_v44, %v1128_v42  ;;  %v871_v59 = vadd.f32 %v870_v55, %v228_v36  ;;  %v872_v61 = vpop.f32.mrb[42].mxu1  ;;  %v1238_v63 = vpack.c.bf16 %v1134_v48, %v1130_v46 }
 0x14a   :  { %v1007_v58 = vmul.f32 0.01, %v676_v49  ;;  %v680_v60 = vadd.f32 %v679_v56, %v233_v40  ;;  %v681_v62 = vpop.f32.mrb[43].mxu0  ;;  %v1009_v1 = vmul.f32 0.01, %v869_v53  ;;  %v873_v2 = vadd.f32 %v872_v61, %v233_v40  ;;  %v874_v4 = vpop.f32.mrb[43].mxu1 }
 0x14b   :  { %v1008_v0 = vmul.f32 0.01, %v678_v54  ;;  %v682_v3 = vadd.f32 %v681_v62, %v233_v40  ;;  %1457 = vmatprep.subr.bf16.mxu0 %v1236_v57  ;;  %v1010_v5 = vmul.f32 0.01, %v871_v59  ;;  %v875_v7 = vadd.f32 %v874_v4, %v233_v40  ;;  %1570 = vmatprep.subr.bf16.mxu1 %v1238_v63  ;;  %v248_v48 = vpop.permute.xlu0 %247 }
 0x14c   :  { %v1011_v6 = vmul.f32 0.01, %v680_v60  ;;  %1458 = vmatpush1.bf16.msra.mxu0 %v1235_v47  ;;  %v1013_v8 = vmul.f32 0.01, %v873_v2  ;;  %1571 = vmatpush1.bf16.msra.mxu1 %v1237_v52  ;;  %v1135_v11 = vmax.f32 %v676_v49, %v1007_v58  ;;  %v1137_v15 = vmax.f32 %v869_v53, %v1009_v1  ;;  %v253_v52 = vpop.permute.xlu1 %252 }
 0x14d   :  { %v1012_v9 = vmul.f32 0.01, %v682_v3  ;;  %v1014_v13 = vmul.f32 0.01, %v875_v7  ;;  %v1136_v16 = vmax.f32 %v678_v54, %v1008_v0  ;;  %v1138_v20 = vmax.f32 %v871_v59, %v1010_v5 }
 0x14e   :  { %v1139_v12 = vmax.f32 %v680_v60, %v1011_v6  ;;  %v1141_v17 = vmax.f32 %v873_v2, %v1013_v8 }
 0x14f   :  { %v1140_v18 = vmax.f32 %v682_v3, %v1012_v9  ;;  %v685_v19 = vpop.f32.mrb[44].mxu0  ;;  %v1142_v22 = vmax.f32 %v875_v7, %v1014_v13  ;;  %v878_v24 = vpop.f32.mrb[44].mxu1 }
 0x150   :  { %v1239_v21 = vpack.c.bf16 %v1139_v12, %v1135_v11  ;;  %v686_v23 = vadd.f32 %v685_v19, %v238_v10  ;;  %v687_v25 = vpop.f32.mrb[45].mxu0  ;;  %v1241_v26 = vpack.c.bf16 %v1141_v17, %v1137_v15  ;;  %v879_v27 = vadd.f32 %v878_v24, %v238_v10  ;;  %v880_v29 = vpop.f32.mrb[45].mxu1 }
 0x151   :  { %v688_v28 = vadd.f32 %v687_v25, %v238_v10  ;;  %v689_v30 = vpop.f32.mrb[46].mxu0  ;;  %v1240_v31 = vpack.c.bf16 %v1140_v18, %v1136_v16  ;;  %v881_v33 = vadd.f32 %v880_v29, %v238_v10  ;;  %v882_v35 = vpop.f32.mrb[46].mxu1  ;;  %v1242_v37 = vpack.c.bf16 %v1142_v22, %v1138_v20 }
 0x152   :  { %v1015_v32 = vmul.f32 0.01, %v686_v23  ;;  %v690_v34 = vadd.f32 %v689_v30, %v243_v14  ;;  %v691_v36 = vpop.f32.mrb[47].mxu0  ;;  %v1017_v38 = vmul.f32 0.01, %v879_v27  ;;  %v883_v40 = vadd.f32 %v882_v35, %v243_v14  ;;  %v884_v42 = vpop.f32.mrb[47].mxu1 }
 0x153   :  { %v1016_v39 = vmul.f32 0.01, %v688_v28  ;;  %v692_v41 = vadd.f32 %v691_v36, %v243_v14  ;;  %1459 = vmatprep.subr.bf16.mxu0 %v1240_v31  ;;  %v1018_v43 = vmul.f32 0.01, %v881_v33  ;;  %v885_v45 = vadd.f32 %v884_v42, %v243_v14  ;;  %1572 = vmatprep.subr.bf16.mxu1 %v1242_v37  ;;  %v258_v22 = vpop.permute.xlu0 %257 }
 0x154   :  { %v1019_v44 = vmul.f32 0.01, %v690_v34  ;;  %1460 = vmatpush1.bf16.msra.mxu0 %v1239_v21  ;;  %v1021_v46 = vmul.f32 0.01, %v883_v40  ;;  %1573 = vmatpush1.bf16.msra.mxu1 %v1241_v26  ;;  %v1143_v49 = vmax.f32 %v686_v23, %v1015_v32  ;;  %v1145_v53 = vmax.f32 %v879_v27, %v1017_v38  ;;  %v263_v26 = vpop.permute.xlu1 %262 }
 0x155   :  { %v1020_v47 = vmul.f32 0.01, %v692_v41  ;;  %v1022_v51 = vmul.f32 0.01, %v885_v45  ;;  %v1144_v54 = vmax.f32 %v688_v28, %v1016_v39  ;;  %v1146_v58 = vmax.f32 %v881_v33, %v1018_v43 }
 0x156   :  { %v1147_v50 = vmax.f32 %v690_v34, %v1019_v44  ;;  %v1149_v55 = vmax.f32 %v883_v40, %v1021_v46 }
 0x157   :  { %v1148_v56 = vmax.f32 %v692_v41, %v1020_v47  ;;  %v695_v57 = vpop.f32.mrb[48].mxu0  ;;  %v1150_v60 = vmax.f32 %v885_v45, %v1022_v51  ;;  %v888_v62 = vpop.f32.mrb[48].mxu1 }
 0x158   :  { %v1243_v59 = vpack.c.bf16 %v1147_v50, %v1143_v49  ;;  %v696_v61 = vadd.f32 %v695_v57, %v248_v48  ;;  %v697_v63 = vpop.f32.mrb[49].mxu0  ;;  %v1245_v1 = vpack.c.bf16 %v1149_v55, %v1145_v53  ;;  %v889_v0 = vadd.f32 %v888_v62, %v248_v48  ;;  %v890_v3 = vpop.f32.mrb[49].mxu1 }
 0x159   :  { %v698_v2 = vadd.f32 %v697_v63, %v248_v48  ;;  %v699_v4 = vpop.f32.mrb[50].mxu0  ;;  %v1244_v5 = vpack.c.bf16 %v1148_v56, %v1144_v54  ;;  %v891_v7 = vadd.f32 %v890_v3, %v248_v48  ;;  %v892_v9 = vpop.f32.mrb[50].mxu1  ;;  %v1246_v11 = vpack.c.bf16 %v1150_v60, %v1146_v58 }
 0x15a   :  { %v1023_v6 = vmul.f32 0.01, %v696_v61  ;;  %v700_v8 = vadd.f32 %v699_v4, %v253_v52  ;;  %v701_v10 = vpop.f32.mrb[51].mxu0  ;;  %v1025_v12 = vmul.f32 0.01, %v889_v0  ;;  %v893_v14 = vadd.f32 %v892_v9, %v253_v52  ;;  %v894_v16 = vpop.f32.mrb[51].mxu1 }
 0x15b   :  { %v1024_v13 = vmul.f32 0.01, %v698_v2  ;;  %v702_v15 = vadd.f32 %v701_v10, %v253_v52  ;;  %1461 = vmatprep.subr.bf16.mxu0 %v1244_v5  ;;  %v1026_v17 = vmul.f32 0.01, %v891_v7  ;;  %v895_v19 = vadd.f32 %v894_v16, %v253_v52  ;;  %1574 = vmatprep.subr.bf16.mxu1 %v1246_v11  ;;  %v268_v60 = vpop.permute.xlu0 %267 }
 0x15c   :  { %v1027_v18 = vmul.f32 0.01, %v700_v8  ;;  %1462 = vmatpush1.bf16.msra.mxu0 %v1243_v59  ;;  %v1029_v20 = vmul.f32 0.01, %v893_v14  ;;  %1575 = vmatpush1.bf16.msra.mxu1 %v1245_v1  ;;  %v1151_v23 = vmax.f32 %v696_v61, %v1023_v6  ;;  %v1153_v27 = vmax.f32 %v889_v0, %v1025_v12  ;;  %v273_v1 = vpop.permute.xlu1 %272 }
 0x15d   :  { %v1028_v21 = vmul.f32 0.01, %v702_v15  ;;  %v1030_v25 = vmul.f32 0.01, %v895_v19  ;;  %v1152_v28 = vmax.f32 %v698_v2, %v1024_v13  ;;  %v1154_v32 = vmax.f32 %v891_v7, %v1026_v17 }
 0x15e   :  { %v1155_v24 = vmax.f32 %v700_v8, %v1027_v18  ;;  %v1157_v29 = vmax.f32 %v893_v14, %v1029_v20 }
 0x15f   :  { %v1156_v30 = vmax.f32 %v702_v15, %v1028_v21  ;;  %v705_v31 = vpop.f32.mrb[52].mxu0  ;;  %v1158_v34 = vmax.f32 %v895_v19, %v1030_v25  ;;  %v898_v36 = vpop.f32.mrb[52].mxu1 }
 0x160   :  { %v1247_v33 = vpack.c.bf16 %v1155_v24, %v1151_v23  ;;  %v706_v35 = vadd.f32 %v705_v31, %v258_v22  ;;  %v707_v37 = vpop.f32.mrb[53].mxu0  ;;  %v1249_v38 = vpack.c.bf16 %v1157_v29, %v1153_v27  ;;  %v899_v39 = vadd.f32 %v898_v36, %v258_v22  ;;  %v900_v41 = vpop.f32.mrb[53].mxu1 }
 0x161   :  { %v708_v40 = vadd.f32 %v707_v37, %v258_v22  ;;  %v709_v42 = vpop.f32.mrb[54].mxu0  ;;  %v1248_v43 = vpack.c.bf16 %v1156_v30, %v1152_v28  ;;  %v901_v45 = vadd.f32 %v900_v41, %v258_v22  ;;  %v902_v47 = vpop.f32.mrb[54].mxu1  ;;  %v1250_v49 = vpack.c.bf16 %v1158_v34, %v1154_v32 }
 0x162   :  { %v1031_v44 = vmul.f32 0.01, %v706_v35  ;;  %v710_v46 = vadd.f32 %v709_v42, %v263_v26  ;;  %v711_v48 = vpop.f32.mrb[55].mxu0  ;;  %v1033_v50 = vmul.f32 0.01, %v899_v39  ;;  %v903_v52 = vadd.f32 %v902_v47, %v263_v26  ;;  %v904_v54 = vpop.f32.mrb[55].mxu1 }
 0x163   :  { %v1032_v51 = vmul.f32 0.01, %v708_v40  ;;  %v712_v53 = vadd.f32 %v711_v48, %v263_v26  ;;  %1463 = vmatprep.subr.bf16.mxu0 %v1248_v43  ;;  %v1034_v55 = vmul.f32 0.01, %v901_v45  ;;  %v905_v57 = vadd.f32 %v904_v54, %v263_v26  ;;  %1576 = vmatprep.subr.bf16.mxu1 %v1250_v49  ;;  %v278_v34 = vpop.permute.xlu0 %277 }
 0x164   :  { %v1035_v56 = vmul.f32 0.01, %v710_v46  ;;  %1464 = vmatpush1.bf16.msra.mxu0 %v1247_v33  ;;  %v1037_v58 = vmul.f32 0.01, %v903_v52  ;;  %1577 = vmatpush1.bf16.msra.mxu1 %v1249_v38  ;;  %v1159_v61 = vmax.f32 %v706_v35, %v1031_v44  ;;  %v1161_v0 = vmax.f32 %v899_v39, %v1033_v50  ;;  %v283_v38 = vpop.permute.xlu1 %282 }
 0x165   :  { %v1036_v59 = vmul.f32 0.01, %v712_v53  ;;  %v1038_v63 = vmul.f32 0.01, %v905_v57  ;;  %v1160_v2 = vmax.f32 %v708_v40, %v1032_v51  ;;  %v1162_v6 = vmax.f32 %v901_v45, %v1034_v55 }
 0x166   :  { %v1163_v62 = vmax.f32 %v710_v46, %v1035_v56  ;;  %v1165_v3 = vmax.f32 %v903_v52, %v1037_v58 }
 0x167   :  { %v1164_v4 = vmax.f32 %v712_v53, %v1036_v59  ;;  %v715_v5 = vpop.f32.mrb[56].mxu0  ;;  %v1166_v8 = vmax.f32 %v905_v57, %v1038_v63  ;;  %v908_v10 = vpop.f32.mrb[56].mxu1 }
 0x168   :  { %v1251_v7 = vpack.c.bf16 %v1163_v62, %v1159_v61  ;;  %v716_v9 = vadd.f32 %v715_v5, %v268_v60  ;;  %v717_v11 = vpop.f32.mrb[57].mxu0  ;;  %v1253_v12 = vpack.c.bf16 %v1165_v3, %v1161_v0  ;;  %v909_v13 = vadd.f32 %v908_v10, %v268_v60  ;;  %v910_v15 = vpop.f32.mrb[57].mxu1 }
 0x169   :  { %v718_v14 = vadd.f32 %v717_v11, %v268_v60  ;;  %v719_v16 = vpop.f32.mrb[58].mxu0  ;;  %v1252_v17 = vpack.c.bf16 %v1164_v4, %v1160_v2  ;;  %v911_v19 = vadd.f32 %v910_v15, %v268_v60  ;;  %v912_v21 = vpop.f32.mrb[58].mxu1  ;;  %v1254_v23 = vpack.c.bf16 %v1166_v8, %v1162_v6 }
 0x16a   :  { %v1039_v18 = vmul.f32 0.01, %v716_v9  ;;  %v720_v20 = vadd.f32 %v719_v16, %v273_v1  ;;  %v721_v22 = vpop.f32.mrb[59].mxu0  ;;  %v1041_v24 = vmul.f32 0.01, %v909_v13  ;;  %v913_v26 = vadd.f32 %v912_v21, %v273_v1  ;;  %v914_v28 = vpop.f32.mrb[59].mxu1 }
 0x16b   :  { %v1040_v25 = vmul.f32 0.01, %v718_v14  ;;  %v722_v27 = vadd.f32 %v721_v22, %v273_v1  ;;  %1465 = vmatprep.subr.bf16.mxu0 %v1252_v17  ;;  %v1042_v29 = vmul.f32 0.01, %v911_v19  ;;  %v915_v31 = vadd.f32 %v914_v28, %v273_v1  ;;  %1578 = vmatprep.subr.bf16.mxu1 %v1254_v23  ;;  %v2245_v21 = vld [vmem:[%s2903_s3] ss:$8 sps:$4 sm:$0xff]  }
 0x16c   :  { %v1043_v30 = vmul.f32 0.01, %v720_v20  ;;  %1466 = vmatpush1.bf16.msra.mxu0 %v1251_v7  ;;  %v1045_v32 = vmul.f32 0.01, %v913_v26  ;;  %1579 = vmatpush1.bf16.msra.mxu1 %v1253_v12  ;;  %v1167_v35 = vmax.f32 %v716_v9, %v1039_v18  ;;  %v1169_v39 = vmax.f32 %v909_v13, %v1041_v24  ;;  %v2248_v22 = vld [vmem:[%s2903_s3 + $0x14] ss:$8 sps:$4 sm:$0xff]  }
 0x16d   :  { %v1044_v33 = vmul.f32 0.01, %v722_v27  ;;  %v1046_v37 = vmul.f32 0.01, %v915_v31  ;;  %v1168_v40 = vmax.f32 %v718_v14, %v1040_v25  ;;  %v1170_v44 = vmax.f32 %v911_v19, %v1042_v29  ;;  %v2250_v23 = vld [vmem:[%s2903_s3 + $0x10] ss:$8 sps:$4 sm:$0xff]  }
 0x16e   :  { %v1171_v36 = vmax.f32 %v720_v20, %v1043_v30  ;;  %v1173_v41 = vmax.f32 %v913_v26, %v1045_v32  ;;  %v2251_v24 = vld [vmem:[%s2903_s3 + $0x24] ss:$8 sps:$4 sm:$0xff]   ;;  %v2253_v25 = vld [vmem:[%s2903_s3 + $0x20] ss:$8 sps:$4 sm:$0xff]   ;;  %v2254_v26 = vld [vmem:[%s2903_s3 + $0x34] ss:$8 sps:$4 sm:$0xff]  }
 0x16f   :  { %v1172_v42 = vmax.f32 %v722_v27, %v1044_v33  ;;  %v725_v43 = vpop.f32.mrb[60].mxu0  ;;  %v1174_v46 = vmax.f32 %v915_v31, %v1046_v37  ;;  %v918_v48 = vpop.f32.mrb[60].mxu1  ;;  %v2256_v27 = vld [vmem:[%s2903_s3 + $0x30] ss:$8 sps:$4 sm:$0xff]   ;;  %v2257_v28 = vld [vmem:[%s2903_s3 + $0x44] ss:$8 sps:$4 sm:$0xff]  }
 0x170   :  { %v1255_v45 = vpack.c.bf16 %v1171_v36, %v1167_v35  ;;  %v726_v47 = vadd.f32 %v725_v43, %v278_v34  ;;  %v727_v49 = vpop.f32.mrb[61].mxu0  ;;  %v1257_v50 = vpack.c.bf16 %v1173_v41, %v1169_v39  ;;  %v919_v51 = vadd.f32 %v918_v48, %v278_v34  ;;  %v920_v53 = vpop.f32.mrb[61].mxu1  ;;  %v2259_v29 = vld [vmem:[%s2903_s3 + $0x40] ss:$8 sps:$4 sm:$0xff]   ;;  %v2260_v30 = vld [vmem:[%s2903_s3 + $0x54] ss:$8 sps:$4 sm:$0xff]  }
 0x171   :  { %v728_v52 = vadd.f32 %v727_v49, %v278_v34  ;;  %v729_v54 = vpop.f32.mrb[62].mxu0  ;;  %v1256_v55 = vpack.c.bf16 %v1172_v42, %v1168_v40  ;;  %v921_v57 = vadd.f32 %v920_v53, %v278_v34  ;;  %v922_v59 = vpop.f32.mrb[62].mxu1  ;;  %v1258_v61 = vpack.c.bf16 %v1174_v46, %v1170_v44  ;;  %v2262_v31 = vld [vmem:[%s2903_s3 + $0x50] ss:$8 sps:$4 sm:$0xff]   ;;  %v2263_v32 = vld [vmem:[%s2903_s3 + $0x64] ss:$8 sps:$4 sm:$0xff]  }
 0x172   :  { %v1047_v56 = vmul.f32 0.01, %v726_v47  ;;  %v730_v58 = vadd.f32 %v729_v54, %v283_v38  ;;  %v731_v60 = vpop.f32.mrb[63].mxu0  ;;  %v1049_v62 = vmul.f32 0.01, %v919_v51  ;;  %v923_v1 = vadd.f32 %v922_v59, %v283_v38  ;;  %v924_v2 = vpop.f32.mrb[63].mxu1 }
 0x173   :  { %v1048_v63 = vmul.f32 0.01, %v728_v52  ;;  %v732_v0 = vadd.f32 %v731_v60, %v283_v38  ;;  %1467 = vmatprep.subr.bf16.mxu0 %v1256_v55  ;;  %v1050_v3 = vmul.f32 0.01, %v921_v57  ;;  %v925_v5 = vadd.f32 %v924_v2, %v283_v38  ;;  %1580 = vmatprep.subr.bf16.mxu1 %v1258_v61  ;;  %v2265_v33 = vld [vmem:[%s2903_s3 + $0x60] ss:$8 sps:$4 sm:$0xff]   ;;  %v1282_v36 = vpop.permute.xlu0 %1281  ;;  %v1287_v37 = vpop.permute.xlu1 %1286 }
 0x174   :  { %v1051_v4 = vmul.f32 0.01, %v730_v58  ;;  %1468 = vmatpush1.bf16.msra.mxu0 %v1255_v45  ;;  %v1053_v6 = vmul.f32 0.01, %v923_v1  ;;  %1581 = vmatpush1.bf16.msra.mxu1 %v1257_v50  ;;  %v1175_v8 = vmax.f32 %v726_v47, %v1047_v56  ;;  %v1177_v11 = vmax.f32 %v919_v51, %v1049_v62  ;;  %v2266_v34 = vld [vmem:[%s2903_s3 + $0x74] ss:$8 sps:$4 sm:$0xff]  }
 0x175   :  { %v1052_v7 = vmul.f32 0.01, %v732_v0  ;;  %v1054_v10 = vmul.f32 0.01, %v925_v5  ;;  %v1176_v12 = vmax.f32 %v728_v52, %v1048_v63  ;;  %v1178_v15 = vmax.f32 %v921_v57, %v1050_v3  ;;  %v2268_v35 = vld [vmem:[%s2903_s3 + $0x70] ss:$8 sps:$4 sm:$0xff]  }
 0x176   :  { %v1179_v9 = vmax.f32 %v730_v58, %v1051_v4  ;;  %v1181_v13 = vmax.f32 %v923_v1, %v1053_v6 }
 0x177   :  { %v1180_v14 = vmax.f32 %v732_v0, %v1052_v7  ;;  %v1182_v17 = vmax.f32 %v925_v5, %v1054_v10  ;;  %v2748_v38 = vpop.permute.xlu0 %1291  ;;  %v2750_v39 = vpop.permute.xlu1 %1296 }
 0x178   :  { %v1259_v16 = vpack.c.bf16 %v1179_v9, %v1175_v8  ;;  %v1261_v18 = vpack.c.bf16 %v1181_v13, %v1177_v11 }
 0x179   :  { %v1260_v19 = vpack.c.bf16 %v1180_v14, %v1176_v12  ;;  %v1262_v20 = vpack.c.bf16 %v1182_v17, %v1178_v15 }
 0x17b   :  { %1469 = vmatprep.subr.bf16.mxu0 %v1260_v19  ;;  %1582 = vmatprep.subr.bf16.mxu1 %v1262_v20  ;;  %v2752_v40 = vpop.permute.xlu0 %1301  ;;  %v1812_v41 = vpop.permute.xlu1 %1811 }
 0x17c   :  { %1470 = vmatpush1.bf16.msra.mxu0 %v1259_v16  ;;  %1583 = vmatpush1.bf16.msra.mxu1 %v1261_v18 }
 0x17f   :  { %1472 = vmatmul.mubr.bf16.vlgmr.msra.gmra.mrb[64].mxu0 %v2245_v21  ;;  %1585 = vmatmul.mubr.bf16.vlgmr.msra.gmra.mrb[64].mxu1 %v2245_v21  ;;  %v1817_v42 = vpop.permute.xlu0 %1816  ;;  %v2754_v43 = vpop.permute.xlu1 %1306 }
 0x180   :  { %1481 = vmatprep.mubr.bf16.mxu0 %v2248_v22  ;;  %1594 = vmatprep.mubr.bf16.mxu1 %v2248_v22 }
 0x183   :  { %v2756_v44 = vpop.permute.xlu0 %1821  ;;  %v2758_v45 = vpop.permute.xlu1 %1311 }
 0x187   :  { %1482 = vmatmul.mubr.bf16.gmra.mrb[68].mxu0 %v2250_v23  ;;  %1595 = vmatmul.mubr.bf16.gmra.mrb[68].mxu1 %v2250_v23  ;;  %v2760_v46 = vpop.permute.xlu0 %1826  ;;  %v2762_v47 = vpop.permute.xlu1 %1316 }
 0x188   :  { %1491 = vmatprep.mubr.bf16.mxu0 %v2251_v24  ;;  %1604 = vmatprep.mubr.bf16.mxu1 %v2251_v24 }
 0x18b   :  { %v2764_v48 = vpop.permute.xlu0 %1831  ;;  %v2766_v11 = vpop.permute.xlu1 %1321 }
 0x18f   :  { %1492 = vmatmul.mubr.bf16.gmra.mrb[72].mxu0 %v2253_v25  ;;  %1605 = vmatmul.mubr.bf16.gmra.mrb[72].mxu1 %v2253_v25  ;;  %v2768_v16 = vpop.permute.xlu0 %1836 }
 0x190   :  { %1501 = vmatprep.mubr.bf16.mxu0 %v2254_v26  ;;  %1614 = vmatprep.mubr.bf16.mxu1 %v2254_v26 }
 0x197   :  { %1502 = vmatmul.mubr.bf16.gmra.mrb[76].mxu0 %v2256_v27  ;;  %1615 = vmatmul.mubr.bf16.gmra.mrb[76].mxu1 %v2256_v27 }
 0x198   :  { %1511 = vmatprep.mubr.bf16.mxu0 %v2257_v28  ;;  %1624 = vmatprep.mubr.bf16.mxu1 %v2257_v28 }
 0x19f   :  { %1512 = vmatmul.mubr.bf16.gmra.mrb[80].mxu0 %v2259_v29  ;;  %1625 = vmatmul.mubr.bf16.gmra.mrb[80].mxu1 %v2259_v29 }
 0x1a0   :  { %1521 = vmatprep.mubr.bf16.mxu0 %v2260_v30  ;;  %1634 = vmatprep.mubr.bf16.mxu1 %v2260_v30 }
 0x1a7   :  { %1522 = vmatmul.mubr.bf16.gmra.mrb[84].mxu0 %v2262_v31  ;;  %1635 = vmatmul.mubr.bf16.gmra.mrb[84].mxu1 %v2262_v31 }
 0x1a8   :  { %1531 = vmatprep.mubr.bf16.mxu0 %v2263_v32  ;;  %1644 = vmatprep.mubr.bf16.mxu1 %v2263_v32 }
 0x1af   :  { %1532 = vmatmul.mubr.bf16.gmra.mrb[88].mxu0 %v2265_v33  ;;  %1645 = vmatmul.mubr.bf16.gmra.mrb[88].mxu1 %v2265_v33 }
 0x1b0   :  { %1541 = vmatprep.mubr.bf16.mxu0 %v2266_v34  ;;  %1654 = vmatprep.mubr.bf16.mxu1 %v2266_v34 }
 0x1b7   :  { %1542 = vmatmul.mubr.bf16.gmra.mrb[92].mxu0 %v2268_v35  ;;  %1655 = vmatmul.mubr.bf16.gmra.mrb[92].mxu1 %v2268_v35 }
 0x252   :  { %v1473_v49 = vpop.f32.mrb[64].mxu0  ;;  %v1586_v51 = vpop.f32.mrb[64].mxu1 }
 0x253   :  { %v1474_v50 = vadd.f32 %v1473_v49, %v1282_v36  ;;  %v1475_v52 = vpop.f32.mrb[65].mxu0  ;;  %v1587_v53 = vadd.f32 %v1586_v51, %v1282_v36  ;;  %v1588_v55 = vpop.f32.mrb[65].mxu1 }
 0x254   :  { %v1476_v54 = vadd.f32 %v1475_v52, %v1282_v36  ;;  %v1477_v56 = vpop.f32.mrb[66].mxu0  ;;  %v1589_v58 = vadd.f32 %v1588_v55, %v1282_v36  ;;  %v1590_v60 = vpop.f32.mrb[66].mxu1 }
 0x255   :  { %v1665_v57 = vmul.f32 0.01, %v1474_v50  ;;  %v1478_v59 = vadd.f32 %v1477_v56, %v1287_v37  ;;  %v1479_v61 = vpop.f32.mrb[67].mxu0  ;;  %v1667_v62 = vmul.f32 0.01, %v1587_v53  ;;  %v1591_v1 = vadd.f32 %v1590_v60, %v1287_v37  ;;  %v1592_v2 = vpop.f32.mrb[67].mxu1 }
 0x256   :  { %v1666_v63 = vmul.f32 0.01, %v1476_v54  ;;  %v1480_v0 = vadd.f32 %v1479_v61, %v1287_v37  ;;  %v1668_v4 = vmul.f32 0.01, %v1589_v58  ;;  %v1593_v6 = vadd.f32 %v1592_v2, %v1287_v37  ;;  %v2781_v2 = vpop.permute.xlu0 %1841 }
 0x257   :  { %v1729_v3 = vmax.f32 %v1474_v50, %v1665_v57  ;;  %v1669_v5 = vmul.f32 0.01, %v1478_v59  ;;  %v1731_v7 = vmax.f32 %v1587_v53, %v1667_v62  ;;  %v1671_v9 = vmul.f32 0.01, %v1591_v1  ;;  %v2777_v62 = vpop.permute.xlu1 %1326 }
 0x258   :  { %v1730_v8 = vmax.f32 %v1476_v54, %v1666_v63  ;;  %v1670_v10 = vmul.f32 0.01, %v1480_v0  ;;  %v1732_v13 = vmax.f32 %v1589_v58, %v1668_v4  ;;  %v1672_v15 = vmul.f32 0.01, %v1593_v6 }
 0x259   :  { %v1889_v12 = vmul.f32 %v1812_v41, %v1729_v3  ;;  %v1733_v14 = vmax.f32 %v1478_v59, %v1669_v5  ;;  %v1891_v17 = vmul.f32 %v1812_v41, %v1731_v7  ;;  %v1735_v19 = vmax.f32 %v1591_v1, %v1671_v9 }
 0x25a   :  { %v1890_v18 = vmul.f32 %v1812_v41, %v1730_v8  ;;  %v1734_v20 = vmax.f32 %v1480_v0, %v1670_v10  ;;  %v1483_v21 = vpop.f32.mrb[68].mxu0  ;;  %v1892_v22 = vmul.f32 %v1812_v41, %v1732_v13  ;;  %v1736_v24 = vmax.f32 %v1593_v6, %v1672_v15  ;;  %v1596_v26 = vpop.f32.mrb[68].mxu1 }
 0x25b   :  { %v1893_v23 = vmul.f32 %v1817_v42, %v1733_v14  ;;  %v1484_v25 = vadd.f32 %v1483_v21, %v2748_v38  ;;  %v1485_v27 = vpop.f32.mrb[69].mxu0  ;;  %v1895_v28 = vmul.f32 %v1817_v42, %v1735_v19  ;;  %v1597_v30 = vadd.f32 %v1596_v26, %v2748_v38  ;;  %v1598_v32 = vpop.f32.mrb[69].mxu1 }
 0x25c   :  { %v1894_v29 = vmul.f32 %v1817_v42, %v1734_v20  ;;  %v1486_v31 = vadd.f32 %v1485_v27, %v2748_v38  ;;  %v1487_v33 = vpop.f32.mrb[70].mxu0  ;;  %v1896_v35 = vmul.f32 %v1817_v42, %v1736_v24  ;;  %v1599_v37 = vadd.f32 %v1598_v32, %v2748_v38  ;;  %v1600_v41 = vpop.f32.mrb[70].mxu1 }
 0x25d   :  { %v1953_v34 = vadd.f32 %v1893_v23, %v1889_v12  ;;  %v1673_v36 = vmul.f32 0.01, %v1484_v25  ;;  %v1489_v49 = vpop.f32.mrb[71].mxu0  ;;  %v1995_v50 = vadd.f32 %v1895_v28, %v1891_v17  ;;  %v1675_v52 = vmul.f32 0.01, %v1597_v30  ;;  %v1602_v54 = vpop.f32.mrb[71].mxu1 }
 0x25e   :  { %v1974_v51 = vadd.f32 %v1894_v29, %v1890_v18  ;;  %v1674_v53 = vmul.f32 0.01, %v1486_v31  ;;  %v2016_v55 = vadd.f32 %v1896_v35, %v1892_v22  ;;  %v1676_v57 = vmul.f32 0.01, %v1599_v37 }
 0x25f   :  { %v1737_v56 = vmax.f32 %v1484_v25, %v1673_v36  ;;  %v1488_v58 = vadd.f32 %v1487_v33, %v2750_v39  ;;  %v1739_v59 = vmax.f32 %v1597_v30, %v1675_v52  ;;  %v1601_v61 = vadd.f32 %v1600_v41, %v2750_v39 }
 0x260   :  { %v1738_v60 = vmax.f32 %v1486_v31, %v1674_v53  ;;  %v1490_v42 = vadd.f32 %v1489_v49, %v2750_v39  ;;  %v1740_v63 = vmax.f32 %v1599_v37, %v1676_v57  ;;  %v1603_v0 = vadd.f32 %v1602_v54, %v2750_v39  ;;  %v2794_v49 = vpop.permute.xlu1 %1331  ;;  %v2797_v54 = vpop.permute.xlu0 %1846 }
 0x261   :  { %v1897_v38 = vmul.f32 %v2756_v44, %v1737_v56  ;;  %v1677_v1 = vmul.f32 0.01, %v1488_v58  ;;  %v1899_v3 = vmul.f32 %v2756_v44, %v1739_v59  ;;  %v1679_v5 = vmul.f32 0.01, %v1601_v61 }
 0x262   :  { %v1898_v4 = vmul.f32 %v2756_v44, %v1738_v60  ;;  %v1678_v6 = vmul.f32 0.01, %v1490_v42  ;;  %v1493_v7 = vpop.f32.mrb[72].mxu0  ;;  %v1900_v9 = vmul.f32 %v2756_v44, %v1740_v63  ;;  %v1680_v12 = vmul.f32 0.01, %v1603_v0  ;;  %v1606_v13 = vpop.f32.mrb[72].mxu1 }
 0x263   :  { %v1954_v8 = vadd.f32 %v1953_v34, %v1897_v38  ;;  %v1741_v10 = vmax.f32 %v1488_v58, %v1677_v1  ;;  %v1495_v14 = vpop.f32.mrb[73].mxu0  ;;  %v1996_v15 = vadd.f32 %v1995_v50, %v1899_v3  ;;  %v1743_v18 = vmax.f32 %v1601_v61, %v1679_v5  ;;  %v1608_v19 = vpop.f32.mrb[73].mxu1 }
 0x264   :  { %v1975_v17 = vadd.f32 %v1974_v51, %v1898_v4  ;;  %v1742_v39 = vmax.f32 %v1490_v42, %v1678_v6  ;;  %v1497_v20 = vpop.f32.mrb[74].mxu0  ;;  %v2017_v21 = vadd.f32 %v2016_v55, %v1900_v9  ;;  %v1744_v23 = vmax.f32 %v1603_v0, %v1680_v12  ;;  %v1610_v25 = vpop.f32.mrb[74].mxu1 }
 0x265   :  { %v1901_v22 = vmul.f32 %v2760_v46, %v1741_v10  ;;  %v1494_v24 = vadd.f32 %v1493_v7, %v2752_v40  ;;  %v1499_v26 = vpop.f32.mrb[75].mxu0  ;;  %v1903_v44 = vmul.f32 %v2760_v46, %v1743_v18  ;;  %v1607_v28 = vadd.f32 %v1606_v13, %v2752_v40  ;;  %v1612_v30 = vpop.f32.mrb[75].mxu1 }
 0x266   :  { %v1902_v27 = vmul.f32 %v2760_v46, %v1742_v39  ;;  %v1496_v29 = vadd.f32 %v1495_v14, %v2752_v40  ;;  %v1904_v32 = vmul.f32 %v2760_v46, %v1744_v23  ;;  %v1609_v34 = vadd.f32 %v1608_v19, %v2752_v40 }
 0x267   :  { %v1955_v31 = vadd.f32 %v1954_v8, %v1901_v22  ;;  %v1681_v33 = vmul.f32 0.01, %v1494_v24  ;;  %v1997_v35 = vadd.f32 %v1996_v15, %v1903_v44  ;;  %v1683_v37 = vmul.f32 0.01, %v1607_v28 }
 0x268   :  { %v1976_v36 = vadd.f32 %v1975_v17, %v1902_v27  ;;  %v1682_v41 = vmul.f32 0.01, %v1496_v29  ;;  %v2018_v50 = vadd.f32 %v2017_v21, %v1904_v32  ;;  %v1684_v52 = vmul.f32 0.01, %v1609_v34 }
 0x269   :  { %v1745_v51 = vmax.f32 %v1494_v24, %v1681_v33  ;;  %v1498_v53 = vadd.f32 %v1497_v20, %v2754_v43  ;;  %v1747_v55 = vmax.f32 %v1607_v28, %v1683_v37  ;;  %v1611_v46 = vadd.f32 %v1610_v25, %v2754_v43  ;;  %v2812_v24 = vpop.permute.xlu1 %1336  ;;  %v2816_v28 = vpop.permute.xlu0 %1851 }
 0x26a   :  { %v1746_v56 = vmax.f32 %v1496_v29, %v1682_v41  ;;  %v1500_v57 = vadd.f32 %v1499_v26, %v2754_v43  ;;  %v1503_v40 = vpop.f32.mrb[76].mxu0  ;;  %v1748_v59 = vmax.f32 %v1609_v34, %v1684_v52  ;;  %v1613_v61 = vadd.f32 %v1612_v30, %v2754_v43  ;;  %v1616_v42 = vpop.f32.mrb[76].mxu1 }
 0x26b   :  { %v1905_v58 = vmul.f32 %v2764_v48, %v1745_v51  ;;  %v1685_v60 = vmul.f32 0.01, %v1498_v53  ;;  %v1505_v38 = vpop.f32.mrb[77].mxu0  ;;  %v1907_v63 = vmul.f32 %v2764_v48, %v1747_v55  ;;  %v1687_v0 = vmul.f32 0.01, %v1611_v46  ;;  %v1618_v4 = vpop.f32.mrb[77].mxu1 }
 0x26c   :  { %v1906_v1 = vmul.f32 %v2764_v48, %v1746_v56  ;;  %v1686_v3 = vmul.f32 0.01, %v1500_v57  ;;  %v1507_v5 = vpop.f32.mrb[78].mxu0  ;;  %v1908_v7 = vmul.f32 %v2764_v48, %v1748_v59  ;;  %v1688_v9 = vmul.f32 0.01, %v1613_v61  ;;  %v1620_v10 = vpop.f32.mrb[78].mxu1 }
 0x26d   :  { %v1956_v6 = vadd.f32 %v1955_v31, %v1905_v58  ;;  %v1749_v8 = vmax.f32 %v1498_v53, %v1685_v60  ;;  %v1509_v12 = vpop.f32.mrb[79].mxu0  ;;  %v1998_v13 = vadd.f32 %v1997_v35, %v1907_v63  ;;  %v1751_v43 = vmax.f32 %v1611_v46, %v1687_v0  ;;  %v1622_v17 = vpop.f32.mrb[79].mxu1 }
 0x26e   :  { %v1977_v14 = vadd.f32 %v1976_v36, %v1906_v1  ;;  %v1750_v15 = vmax.f32 %v1500_v57, %v1686_v3  ;;  %v2019_v18 = vadd.f32 %v2018_v50, %v1908_v7  ;;  %v1752_v19 = vmax.f32 %v1613_v61, %v1688_v9  ;;  %v2826_v9 = vpop.permute.xlu1 %1341 }
 0x26f   :  { %v1909_v39 = vmul.f32 %v2768_v16, %v1749_v8  ;;  %v1504_v20 = vadd.f32 %v1503_v40, %v2758_v45  ;;  %v1911_v21 = vmul.f32 %v2768_v16, %v1751_v43  ;;  %v1617_v48 = vadd.f32 %v1616_v42, %v2758_v45 }
 0x270   :  { %v1910_v22 = vmul.f32 %v2768_v16, %v1750_v15  ;;  %v1506_v23 = vadd.f32 %v1505_v38, %v2758_v45  ;;  %v1912_v26 = vmul.f32 %v2768_v16, %v1752_v19  ;;  %v1619_v27 = vadd.f32 %v1618_v4, %v2758_v45 }
 0x271   :  { %v1957_v25 = vadd.f32 %v1956_v6, %v1909_v39  ;;  %v1689_v44 = vmul.f32 0.01, %v1504_v20  ;;  %v1999_v29 = vadd.f32 %v1998_v13, %v1911_v21  ;;  %v1691_v31 = vmul.f32 0.01, %v1617_v48 }
 0x272   :  { %v1978_v30 = vadd.f32 %v1977_v14, %v1910_v22  ;;  %v1690_v32 = vmul.f32 0.01, %v1506_v23  ;;  %v1513_v33 = vpop.f32.mrb[80].mxu0  ;;  %v2020_v34 = vadd.f32 %v2019_v18, %v1912_v26  ;;  %v1692_v36 = vmul.f32 0.01, %v1619_v27  ;;  %v1626_v41 = vpop.f32.mrb[80].mxu1 }
 0x273   :  { %v1753_v35 = vmax.f32 %v1504_v20, %v1689_v44  ;;  %v1508_v37 = vadd.f32 %v1507_v5, %v2762_v47  ;;  %v1515_v50 = vpop.f32.mrb[81].mxu0  ;;  %v1755_v51 = vmax.f32 %v1617_v48, %v1691_v31  ;;  %v1621_v16 = vadd.f32 %v1620_v10, %v2762_v47  ;;  %v1628_v53 = vpop.f32.mrb[81].mxu1 }
 0x274   :  { %v1754_v52 = vmax.f32 %v1506_v23, %v1690_v32  ;;  %v1510_v45 = vadd.f32 %v1509_v12, %v2762_v47  ;;  %v1517_v55 = vpop.f32.mrb[82].mxu0  ;;  %v1756_v46 = vmax.f32 %v1619_v27, %v1692_v36  ;;  %v1623_v40 = vadd.f32 %v1622_v17, %v2762_v47  ;;  %v1630_v58 = vpop.f32.mrb[82].mxu1 }
 0x275   :  { %v1913_v56 = vmul.f32 %v2781_v2, %v1753_v35  ;;  %v1693_v57 = vmul.f32 0.01, %v1508_v37  ;;  %v1519_v59 = vpop.f32.mrb[83].mxu0  ;;  %v1915_v60 = vmul.f32 %v2781_v2, %v1755_v51  ;;  %v1695_v42 = vmul.f32 0.01, %v1621_v16  ;;  %v1632_v63 = vpop.f32.mrb[83].mxu1 }
 0x276   :  { %v1914_v61 = vmul.f32 %v2781_v2, %v1754_v52  ;;  %v1694_v38 = vmul.f32 0.01, %v1510_v45  ;;  %v1916_v0 = vmul.f32 %v2781_v2, %v1756_v46  ;;  %v1696_v4 = vmul.f32 0.01, %v1623_v40  ;;  %v1857_v14 = vpop.permute.xlu0 %1856  ;;  %v2843_v46 = vpop.permute.xlu1 %1346 }
 0x277   :  { %v1958_v1 = vadd.f32 %v1957_v25, %v1913_v56  ;;  %v1757_v3 = vmax.f32 %v1508_v37, %v1693_v57  ;;  %v2000_v5 = vadd.f32 %v1999_v29, %v1915_v60  ;;  %v1759_v7 = vmax.f32 %v1621_v16, %v1695_v42 }
 0x278   :  { %v1979_v6 = vadd.f32 %v1978_v30, %v1914_v61  ;;  %v1758_v8 = vmax.f32 %v1510_v45, %v1694_v38  ;;  %v2021_v47 = vadd.f32 %v2020_v34, %v1916_v0  ;;  %v1760_v12 = vmax.f32 %v1623_v40, %v1696_v4 }
 0x279   :  { %v1917_v10 = vmul.f32 %v2797_v54, %v1757_v3  ;;  %v1514_v13 = vadd.f32 %v1513_v33, %v2766_v11  ;;  %v1919_v43 = vmul.f32 %v2797_v54, %v1759_v7  ;;  %v1627_v2 = vadd.f32 %v1626_v41, %v2766_v11 }
 0x27a   :  { %v1918_v15 = vmul.f32 %v2797_v54, %v1758_v8  ;;  %v1516_v17 = vadd.f32 %v1515_v50, %v2766_v11  ;;  %v1523_v18 = vpop.f32.mrb[84].mxu0  ;;  %v1920_v19 = vmul.f32 %v2797_v54, %v1760_v12  ;;  %v1629_v21 = vadd.f32 %v1628_v53, %v2766_v11  ;;  %v1636_v22 = vpop.f32.mrb[84].mxu1 }
 0x27b   :  { %v1959_v39 = vadd.f32 %v1958_v1, %v1917_v10  ;;  %v1697_v20 = vmul.f32 0.01, %v1514_v13  ;;  %v1525_v48 = vpop.f32.mrb[85].mxu0  ;;  %v2001_v23 = vadd.f32 %v2000_v5, %v1919_v43  ;;  %v1699_v26 = vmul.f32 0.01, %v1627_v2  ;;  %v1638_v27 = vpop.f32.mrb[85].mxu1 }
 0x27c   :  { %v1980_v25 = vadd.f32 %v1979_v6, %v1918_v15  ;;  %v1698_v44 = vmul.f32 0.01, %v1516_v17  ;;  %v1527_v29 = vpop.f32.mrb[86].mxu0  ;;  %v2022_v30 = vadd.f32 %v2021_v47, %v1920_v19  ;;  %v1700_v32 = vmul.f32 0.01, %v1629_v21  ;;  %v1640_v34 = vpop.f32.mrb[86].mxu1 }
 0x27d   :  { %v1761_v31 = vmax.f32 %v1514_v13, %v1697_v20  ;;  %v1518_v33 = vadd.f32 %v1517_v55, %v2777_v62  ;;  %v1529_v35 = vpop.f32.mrb[87].mxu0  ;;  %v1763_v36 = vmax.f32 %v1627_v2, %v1699_v26  ;;  %v1631_v37 = vadd.f32 %v1630_v58, %v2777_v62  ;;  %v1642_v41 = vpop.f32.mrb[87].mxu1 }
 0x27e   :  { %v1762_v54 = vmax.f32 %v1516_v17, %v1698_v44  ;;  %v1520_v11 = vadd.f32 %v1519_v59, %v2777_v62  ;;  %v1764_v51 = vmax.f32 %v1629_v21, %v1700_v32  ;;  %v1633_v16 = vadd.f32 %v1632_v63, %v2777_v62  ;;  %v1862_v60 = vpop.permute.xlu0 %1861 }
 0x27f   :  { %v1921_v50 = vmul.f32 %v2816_v28, %v1761_v31  ;;  %v1701_v52 = vmul.f32 0.01, %v1518_v33  ;;  %v1923_v45 = vmul.f32 %v2816_v28, %v1763_v36  ;;  %v1703_v55 = vmul.f32 0.01, %v1631_v37 }
 0x280   :  { %v1922_v53 = vmul.f32 %v2816_v28, %v1762_v54  ;;  %v1702_v56 = vmul.f32 0.01, %v1520_v11  ;;  %v1924_v40 = vmul.f32 %v2816_v28, %v1764_v51  ;;  %v1704_v59 = vmul.f32 0.01, %v1633_v16 }
 0x281   :  { %v1960_v57 = vadd.f32 %v1959_v39, %v1921_v50  ;;  %v1765_v58 = vmax.f32 %v1518_v33, %v1701_v52  ;;  %v2002_v61 = vadd.f32 %v2001_v23, %v1923_v45  ;;  %v1767_v38 = vmax.f32 %v1631_v37, %v1703_v55 }
 0x282   :  { %v1981_v42 = vadd.f32 %v1980_v25, %v1922_v53  ;;  %v1766_v1 = vmax.f32 %v1520_v11, %v1702_v56  ;;  %v1533_v0 = vpop.f32.mrb[88].mxu0  ;;  %v2023_v62 = vadd.f32 %v2022_v30, %v1924_v40  ;;  %v1768_v3 = vmax.f32 %v1633_v16, %v1704_v59  ;;  %v1646_v5 = vpop.f32.mrb[88].mxu1 }
 0x283   :  { %v1925_v63 = vmul.f32 %v1857_v14, %v1765_v58  ;;  %v1524_v4 = vadd.f32 %v1523_v18, %v2794_v49  ;;  %v1535_v6 = vpop.f32.mrb[89].mxu0  ;;  %v1927_v7 = vmul.f32 %v1857_v14, %v1767_v38  ;;  %v1637_v47 = vadd.f32 %v1636_v22, %v2794_v49  ;;  %v1648_v10 = vpop.f32.mrb[89].mxu1 }
 0x284   :  { %v1926_v8 = vmul.f32 %v1857_v14, %v1766_v1  ;;  %v1526_v28 = vadd.f32 %v1525_v48, %v2794_v49  ;;  %v2849_v12 = vpop.f32.mrb[90].mxu0  ;;  %v1928_v43 = vmul.f32 %v1857_v14, %v1768_v3  ;;  %v1639_v2 = vadd.f32 %v1638_v27, %v2794_v49  ;;  %v2852_v17 = vpop.f32.mrb[90].mxu1 }
 0x285   :  { %v1961_v13 = vadd.f32 %v1960_v57, %v1925_v63  ;;  %v1705_v15 = vmul.f32 0.01, %v1524_v4  ;;  %v2854_v39 = vpop.f32.mrb[91].mxu0  ;;  %v2003_v18 = vadd.f32 %v2002_v61, %v1927_v7  ;;  %v1707_v20 = vmul.f32 0.01, %v1637_v47  ;;  %v2856_v23 = vpop.f32.mrb[91].mxu1 }
 0x286   :  { %v1982_v19 = vadd.f32 %v1981_v42, %v1926_v8  ;;  %v1706_v21 = vmul.f32 0.01, %v1526_v28  ;;  %v2024_v22 = vadd.f32 %v2023_v62, %v1928_v43  ;;  %v1708_v25 = vmul.f32 0.01, %v1639_v2  ;;  %v2861_v27 = vpop.permute.xlu1 %1351  ;;  %v1867_v54 = vpop.permute.xlu0 %1866 }
 0x287   :  { %v1769_v48 = vmax.f32 %v1524_v4, %v1705_v15  ;;  %v1528_v26 = vadd.f32 %v1527_v29, %v2812_v24  ;;  %v1771_v44 = vmax.f32 %v1637_v47, %v1707_v20  ;;  %v1641_v30 = vadd.f32 %v1640_v34, %v2812_v24 }
 0x288   :  { %v1770_v14 = vmax.f32 %v1526_v28, %v1706_v21  ;;  %v1530_v49 = vadd.f32 %v1529_v35, %v2812_v24  ;;  %v1772_v32 = vmax.f32 %v1639_v2, %v1708_v25  ;;  %v1643_v36 = vadd.f32 %v1642_v41, %v2812_v24 }
 0x289   :  { %v1929_v31 = vmul.f32 %v1862_v60, %v1769_v48  ;;  %v1709_v33 = vmul.f32 0.01, %v1528_v26  ;;  %v1931_v37 = vmul.f32 %v1862_v60, %v1771_v44  ;;  %v1711_v50 = vmul.f32 0.01, %v1641_v30 }
 0x28a   :  { %v1930_v11 = vmul.f32 %v1862_v60, %v1770_v14  ;;  %v1710_v51 = vmul.f32 0.01, %v1530_v49  ;;  %v1543_v52 = vpop.f32.mrb[92].mxu0  ;;  %v1932_v16 = vmul.f32 %v1862_v60, %v1772_v32  ;;  %v1712_v53 = vmul.f32 0.01, %v1643_v36  ;;  %v1656_v34 = vpop.f32.mrb[92].mxu1 }
 0x28b   :  { %v1962_v29 = vadd.f32 %v1961_v13, %v1929_v31  ;;  %v1773_v45 = vmax.f32 %v1528_v26, %v1709_v33  ;;  %v1545_v55 = vpop.f32.mrb[93].mxu0  ;;  %v2004_v35 = vadd.f32 %v2003_v18, %v1931_v37  ;;  %v1775_v57 = vmax.f32 %v1641_v30, %v1711_v50  ;;  %v1658_v58 = vpop.f32.mrb[93].mxu1 }
 0x28c   :  { %v1983_v56 = vadd.f32 %v1982_v19, %v1930_v11  ;;  %v1774_v40 = vmax.f32 %v1530_v49, %v1710_v51  ;;  %v2864_v59 = vpop.f32.mrb[94].mxu0  ;;  %v2025_v24 = vadd.f32 %v2024_v22, %v1932_v16  ;;  %v1776_v61 = vmax.f32 %v1643_v36, %v1712_v53  ;;  %v2867_v38 = vpop.f32.mrb[94].mxu1 }
 0x28d   :  { %v1933_v41 = vmul.f32 %v1867_v54, %v1773_v45  ;;  %v1534_v42 = vadd.f32 %v1533_v0, %v2826_v9  ;;  %v2869_v1 = vpop.f32.mrb[95].mxu0  ;;  %v1935_v60 = vmul.f32 %v1867_v54, %v1775_v57  ;;  %v1647_v63 = vadd.f32 %v1646_v5, %v2826_v9  ;;  %v2873_v4 = vpop.f32.mrb[95].mxu1 }
 0x28e   :  { %v1934_v62 = vmul.f32 %v1867_v54, %v1774_v40  ;;  %v1536_v3 = vadd.f32 %v1535_v6, %v2826_v9  ;;  %v1936_v8 = vmul.f32 %v1867_v54, %v1776_v61  ;;  %v1649_v28 = vadd.f32 %v1648_v10, %v2826_v9  ;;  %v1357_v13 = vpop.permute.xlu1 %1356  ;;  %v1872_v21 = vpop.permute.xlu0 %1871 }
 0x28f   :  { %v1963_v7 = vadd.f32 %v1962_v29, %v1933_v41  ;;  %v1713_v47 = vmul.f32 0.01, %v1534_v42  ;;  %v2005_v43 = vadd.f32 %v2004_v35, %v1935_v60  ;;  %v1715_v15 = vmul.f32 0.01, %v1647_v63 }
 0x290   :  { %v1984_v0 = vadd.f32 %v1983_v56, %v1934_v62  ;;  %v1714_v2 = vmul.f32 0.01, %v1536_v3  ;;  %v2026_v18 = vadd.f32 %v2025_v24, %v1936_v8  ;;  %v1716_v20 = vmul.f32 0.01, %v1649_v28 }
 0x291   :  { %v1777_v19 = vmax.f32 %v1534_v42, %v1713_v47  ;;  %v1538_v5 = vadd.f32 %v2849_v12, %v2843_v46  ;;  %v1779_v6 = vmax.f32 %v1647_v63, %v1715_v15  ;;  %v1651_v48 = vadd.f32 %v2852_v17, %v2843_v46 }
 0x292   :  { %v1778_v22 = vmax.f32 %v1536_v3, %v1714_v2  ;;  %v1540_v9 = vadd.f32 %v2854_v39, %v2843_v46  ;;  %v1780_v25 = vmax.f32 %v1649_v28, %v1716_v20  ;;  %v1653_v44 = vadd.f32 %v2856_v23, %v2843_v46  ;;  %v1877_v54 = vpop.permute.xlu1 %1876  ;;  %v1882_v3 = vpop.permute.xlu0 %1881 }
 0x293   :  { %v1937_v10 = vmul.f32 %v1872_v21, %v1777_v19  ;;  %v1717_v26 = vmul.f32 0.01, %v1538_v5  ;;  %v1939_v14 = vmul.f32 %v1872_v21, %v1779_v6  ;;  %v1719_v49 = vmul.f32 0.01, %v1651_v48 }
 0x294   :  { %v1938_v30 = vmul.f32 %v1872_v21, %v1778_v22  ;;  %v1718_v31 = vmul.f32 0.01, %v1540_v9  ;;  %v1940_v32 = vmul.f32 %v1872_v21, %v1780_v25  ;;  %v1720_v36 = vmul.f32 0.01, %v1653_v44 }
 0x295   :  { %v1964_v12 = vadd.f32 %v1963_v7, %v1937_v10  ;;  %v1781_v33 = vmax.f32 %v1538_v5, %v1717_v26  ;;  %v2006_v37 = vadd.f32 %v2005_v43, %v1939_v14  ;;  %v1783_v11 = vmax.f32 %v1651_v48, %v1719_v49 }
 0x296   :  { %v1985_v17 = vadd.f32 %v1984_v0, %v1938_v30  ;;  %v1782_v50 = vmax.f32 %v1540_v9, %v1718_v31  ;;  %v2027_v39 = vadd.f32 %v2026_v18, %v1940_v32  ;;  %v1784_v29 = vmax.f32 %v1653_v44, %v1720_v36  ;;  %v1887_v5 = vpop.permute.xlu1 %1886 }
 0x297   :  { %v1941_v51 = vmul.f32 %v1877_v54, %v1781_v33  ;;  %v1544_v16 = vadd.f32 %v1543_v52, %v2861_v27  ;;  %v1943_v45 = vmul.f32 %v1877_v54, %v1783_v11  ;;  %v1657_v23 = vadd.f32 %v1656_v34, %v2861_v27 }
 0x298   :  { %v1942_v46 = vmul.f32 %v1877_v54, %v1782_v50  ;;  %v1546_v53 = vadd.f32 %v1545_v55, %v2861_v27  ;;  %v1944_v56 = vmul.f32 %v1877_v54, %v1784_v29  ;;  %v1659_v40 = vadd.f32 %v1658_v58, %v2861_v27 }
 0x299   :  { %v1965_v35 = vadd.f32 %v1964_v12, %v1941_v51  ;;  %v1721_v57 = vmul.f32 0.01, %v1544_v16  ;;  %v2007_v24 = vadd.f32 %v2006_v37, %v1943_v45  ;;  %v1723_v61 = vmul.f32 0.01, %v1657_v23  ;;  %v2041_v45 = vpop.permute.xlu0 %2040 }
 0x29a   :  { %v1986_v41 = vadd.f32 %v1985_v17, %v1942_v46  ;;  %v1722_v42 = vmul.f32 0.01, %v1546_v53  ;;  %v2028_v60 = vadd.f32 %v2027_v39, %v1944_v56  ;;  %v1724_v63 = vmul.f32 0.01, %v1659_v40 }
 0x29b   :  { %v1785_v62 = vmax.f32 %v1544_v16, %v1721_v57  ;;  %v1548_v52 = vadd.f32 %v2864_v59, %v1357_v13  ;;  %v1787_v7 = vmax.f32 %v1657_v23, %v1723_v61  ;;  %v1661_v34 = vadd.f32 %v2867_v38, %v1357_v13 }
 0x29c   :  { %v1786_v8 = vmax.f32 %v1546_v53, %v1722_v42  ;;  %v1550_v55 = vadd.f32 %v2869_v1, %v1357_v13  ;;  %v1788_v28 = vmax.f32 %v1659_v40, %v1724_v63  ;;  %v1663_v27 = vadd.f32 %v2873_v4, %v1357_v13 }
 0x29d   :  { %v1945_v47 = vmul.f32 %v1882_v3, %v1785_v62  ;;  %v1725_v43 = vmul.f32 0.01, %v1548_v52  ;;  %v1947_v58 = vmul.f32 %v1882_v3, %v1787_v7  ;;  %v1727_v15 = vmul.f32 0.01, %v1661_v34 }
 0x29e   :  { %v1946_v0 = vmul.f32 %v1882_v3, %v1786_v8  ;;  %v1726_v2 = vmul.f32 0.01, %v1550_v55  ;;  %v1948_v19 = vmul.f32 %v1882_v3, %v1788_v28  ;;  %v1728_v59 = vmul.f32 0.01, %v1663_v27 }
 0x29f   :  { %v1966_v18 = vadd.f32 %v1965_v35, %v1945_v47  ;;  %v1789_v20 = vmax.f32 %v1548_v52, %v1725_v43  ;;  %v2008_v21 = vadd.f32 %v2007_v24, %v1947_v58  ;;  %v1791_v22 = vmax.f32 %v1661_v34, %v1727_v15 }
 0x2a0   :  { %v1987_v6 = vadd.f32 %v1986_v41, %v1946_v0  ;;  %v1790_v38 = vmax.f32 %v1550_v55, %v1726_v2  ;;  %v2029_v48 = vadd.f32 %v2028_v60, %v1948_v19  ;;  %v1792_v9 = vmax.f32 %v1663_v27, %v1728_v59 }
 0x2a1   :  { %v1949_v1 = vmul.f32 %v1887_v5, %v1789_v20  ;;  %v1951_v10 = vmul.f32 %v1887_v5, %v1791_v22  ;;  %v2043_v26 = vlaneseq }
 0x2a2   :  { %v1950_v25 = vmul.f32 %v1887_v5, %v1790_v38  ;;  %v1952_v13 = vmul.f32 %v1887_v5, %v1792_v9  ;;  %v2286_v5 = vmov 1966171168  }
 0x2a3   :  { %v1967_v4 = vadd.f32 %v1966_v18, %v1949_v1  ;;  %v2009_v44 = vadd.f32 %v2008_v21, %v1951_v10  ;;  %v2044_v32 = vshrl.u32 %v2043_v26, 7  ;;  %v2082_v21 = vunpack.c.l.s4 %v2286_v5 }
 0x2a4   :  { %v1988_v14 = vadd.f32 %v1987_v6, %v1950_v25  ;;  %v2030_v49 = vadd.f32 %v2029_v48, %v1952_v13  ;;  %vm2106_vm0 = vcmp.lt.s32.totalorder %v2043_v26, 512 }
 0x2a5   :  { %v1968_v30 = vrot.slane %v1967_v4, 4  ;;  %v2010_v31 = vrot.slane %v2009_v44, 4  ;;  %v2045_v51 = vsub.s32 0, %v2044_v32  ;;  %v2083_v6 = vunpack.c.0.s8 %v2082_v21 }
 0x2a6   :  { %v1989_v12 = vrot.slane %v1988_v14, 4  ;;  %v2031_v36 = vrot.slane %v2030_v49, 4 }
 0x2a7   :  { %v1969_v33 = vadd.f32 %v1968_v30, %v1967_v4  ;;  %v2011_v54 = vadd.f32 %v2010_v31, %v2009_v44  ;;  %v2046_v40 = vrot.slane %v2041_v45, %v2045_v51  ;;  %v2086_v48 = vsub.s32 %v2083_v6, %v2044_v32 }
 0x2a8   :  { %v1990_v37 = vadd.f32 %v1989_v12, %v1988_v14  ;;  %v2032_v11 = vadd.f32 %v2031_v36, %v2030_v49 }
 0x2a9   :  { %v1970_v17 = vrot.slane %v1969_v33, 2  ;;  %v2012_v50 = vrot.slane %v2011_v54, 2 }
 0x2aa   :  { %v1991_v39 = vrot.slane %v1990_v37, 2  ;;  %v2033_v16 = vrot.slane %v2032_v11, 2 }
 0x2ab   :  { %v1971_v29 = vadd.f32 %v1970_v17, %v1969_v33  ;;  %v2013_v46 = vadd.f32 %v2012_v50, %v2011_v54 }
 0x2ac   :  { %v1992_v23 = vadd.f32 %v1991_v39, %v1990_v37  ;;  %v2034_v35 = vadd.f32 %v2033_v16, %v2032_v11 }
 0x2ad   :  { %v1972_v53 = vrot.slane %v1971_v29, 1  ;;  %v2014_v56 = vrot.slane %v2013_v46, 1 }
 0x2ae   :  { %v1993_v57 = vrot.slane %v1992_v23, 1  ;;  %v2035_v41 = vrot.slane %v2034_v35, 1 }
 0x2af   :  { %v1973_v24 = vadd.f32 %v1972_v53, %v1971_v29  ;;  %v2015_v61 = vadd.f32 %v2014_v56, %v2013_v46 }
 0x2b0   :  { %v1994_v42 = vadd.f32 %v1993_v57, %v1992_v23  ;;  %v2036_v62 = vadd.f32 %v2035_v41, %v2034_v35 }
 0x2b1   :  { %v2047_v60 = vadd.f32 %v2046_v40, %v1973_v24  ;;  %v2049_v63 = vadd.f32 %v2046_v40, %v2015_v61 }
 0x2b2   :  { %v2048_v52 = vadd.f32 %v2046_v40, %v1994_v42  ;;  %v2050_v7 = vadd.f32 %v2046_v40, %v2036_v62 }
 0x2b3   :  { %v2051_v3 = vsub.f32 0.0, %v2047_v60  ;;  %v2053_v8 = vsub.f32 0.0, %v2049_v63 }
 0x2b4   :  { %v2052_v34 = vsub.f32 0.0, %v2048_v52  ;;  %v2054_v47 = vsub.f32 0.0, %v2050_v7 }
 0x2b5   :  { %v2055_v55 = vmul.f32 1.442695, %v2051_v3  ;;  %v2059_v28 = vmul.f32 1.442695, %v2053_v8 }
 0x2b6   :  { %v2057_v43 = vmul.f32 1.442695, %v2052_v34  ;;  %v2061_v27 = vmul.f32 1.442695, %v2054_v47 }
 0x2b7   :  { %2269 = vpow2.f32 %v2055_v55 }
 0x2b8   :  { %2271 = vpow2.f32 %v2059_v28 }
 0x2b9   :  { %2273 = vpow2.f32 %v2057_v43 }
 0x2ba   :  { %2275 = vpow2.f32 %v2061_v27 }
 0x2c1   :  { %v2270_v58 = vpop.eup %2269 }
 0x2c2   :  { %v2272_v0 = vpop.eup %2271  ;;  %v2063_v15 = vadd.f32 1.0, %v2270_v58 }
 0x2c3   :  { %v2274_v2 = vpop.eup %2273  ;;  %v2065_v18 = vadd.f32 1.0, %v2272_v0 }
 0x2c4   :  { %v2276_v19 = vpop.eup %2275  ;;  %2277 = vrcp.f32 %v2063_v15  ;;  %v2064_v20 = vadd.f32 1.0, %v2274_v2 }
 0x2c5   :  { %2279 = vrcp.f32 %v2065_v18  ;;  %v2066_v59 = vadd.f32 1.0, %v2276_v19 }
 0x2c6   :  { %2281 = vrcp.f32 %v2064_v20 }
 0x2c7   :  { %2283 = vrcp.f32 %v2066_v59 }
 0x2ce   :  { %v2278_v22 = vpop.eup %2277 }
 0x2cf   :  { %v2280_v38 = vpop.eup %2279 }
 0x2d0   :  { %v2282_v1 = vpop.eup %2281 }
 0x2d1   :  { %v2284_v9 = vpop.eup %2283  ;;  %v2079_v10 = vcombine.low %v2278_v22, %v2282_v1 }
 0x2d2   :  { %v2080_v25 = vcombine.low %v2280_v38, %v2284_v9 }
 0x2d3   :  { %v2087_v4 = vrot.slane %v2079_v10, %v2086_v48 }
 0x2d4   :  { %v2094_v13 = vrot.slane %v2080_v25, %v2086_v48 }
 0x2d6   :  { %v2095_v44 = vcombine.low %v2087_v4, %v2094_v13 }
 0x2d8   :  { %v2102_v14 = vrot.slane %v2095_v44, %v2086_v48 }
 0x2da   :  { %2108 = vst.msk [vmem:[%s2904_s7] sm:$0xf] %vm2106_vm0, %v2102_v14 }

</bundles_post_ra>
